<compile_context>
chip_gen: v7x
topology: tpu7x:2x2x1
jax: 0.10.0
libtpu: 0.0.40
codegen_flags: <defaults>
</compile_context>

<pallas_src>
import functools
import math

import jax
import jax.numpy as jnp
from jax import lax
from jax.experimental import pallas as pl
from jax.experimental.pallas import tpu as pltpu

_LANES = 128     # lane-dense channel/tap packing


def _round_up(x, m):
    return (x + m - 1) // m * m


def _pick_tile(m, max_tile=512, min_grid=4):
    """Row tile: multiple of 8, capped, and small enough to give >=min_grid steps."""
    t = _round_up(max(1, -(-m // min_grid)), 8)
    return max(8, min(max_tile, t))


def _mosaic_params():
    return pltpu.CompilerParams(dimension_semantics=("parallel",))


# ----------------------------------------------------------------------------
# Pallas kernels (each grid step: one (tile,128)x(128,128) matmul + epilogue)
# ----------------------------------------------------------------------------

def _s1_kernel(cout, x_ref, w_ref, b_ref, o_ref):
    """taps(x) @ W1 + b1.  Lanes 0:cout = conv+BN (shortcut, no ReLU);
    lanes cout:cout+2*bch = composed 1x1 bottlenecks, ReLU'd."""
    acc = jnp.dot(x_ref[...], w_ref[...],
                  preferred_element_type=jnp.float32) + b_ref[...]
    lane = lax.broadcasted_iota(jnp.int32, acc.shape, 1)
    o_ref[...] = jnp.where(lane < cout, acc, jnp.maximum(acc, 0.0)).astype(o_ref.dtype)


def _s2_kernel(x_ref, w_ref, b_ref, o_ref):
    """taps(z) @ W2 + b2 ; ReLU.  (dilated depthwise + pointwise + BN composed;
    dense branch in lanes 0:cout, residual branch in lanes cout:2*cout)."""
    acc = jnp.dot(x_ref[...], w_ref[...],
                  preferred_element_type=jnp.float32) + b_ref[...]
    o_ref[...] = jnp.maximum(acc, 0.0).astype(o_ref.dtype)


def _s3_kernel(cout, aux_ref, r_ref, w_ref, o_ref):
    """Fusion tail: planes = taps(residual) @ W3 (bilinear-2x stencil, already
    scaled by w0) -> lane groups [ee|eo|oe|oo]; 4-way max via XLU rolls; add the
    pre-folded linear terms (w0*dense + w1*(bu+resid) + shortcut); ReLU.
    Only lanes 0:cout of the output are meaningful (cropped by the wrapper)."""
    planes = jnp.dot(r_ref[...], w_ref[...], preferred_element_type=jnp.float32)
    m = jnp.maximum(planes, pltpu.roll(planes, shift=_LANES - cout, axis=1))
    m = jnp.maximum(m, pltpu.roll(m, shift=_LANES - 2 * cout, axis=1))
    o_ref[...] = jnp.maximum(m + aux_ref[...], 0.0)


# ----------------------------------------------------------------------------
# pallas_call wrappers (all inputs tiled -> pipelined, no resident slabs)
# ----------------------------------------------------------------------------

def _stage_mm(kernel_fn, x_slab, w, b, m_pad, tile, out_dtype):
    return pl.pallas_call(
        kernel_fn,
        out_shape=jax.ShapeDtypeStruct((m_pad, _LANES), out_dtype),
        grid=(m_pad // tile,),
        in_specs=[
            pl.BlockSpec((tile, _LANES), lambda i: (i, 0)),
            pl.BlockSpec((_LANES, _LANES), lambda i: (0, 0)),
            pl.BlockSpec((1, _LANES), lambda i: (0, 0)),
        ],
        out_specs=pl.BlockSpec((tile, _LANES), lambda i: (i, 0)),
        compiler_params=_mosaic_params(),
    )(x_slab, w, b)


def _stage_fuse(kernel_fn, aux_slab, r_slab, w, m_pad, tile):
    return pl.pallas_call(
        kernel_fn,
        out_shape=jax.ShapeDtypeStruct((m_pad, _LANES), jnp.float32),
        grid=(m_pad // tile,),
        in_specs=[
            pl.BlockSpec((tile, _LANES), lambda i: (i, 0)),   # aux (donated)
            pl.BlockSpec((tile, _LANES), lambda i: (i, 0)),   # residual taps
            pl.BlockSpec((_LANES, _LANES), lambda i: (0, 0)),
        ],
        out_specs=pl.BlockSpec((tile, _LANES), lambda i: (i, 0)),
        input_output_aliases={0: 0},     # write in place over the aux slab
        compiler_params=_mosaic_params(),
    )(aux_slab, r_slab, w)


# ----------------------------------------------------------------------------
# glue: tap lane-packing, slabs, pooled-path upsample (tiny, stays in XLA)
# ----------------------------------------------------------------------------

def _tap_pack(x, k, dilation):
    """Stack the k*k (dilated) spatial taps along the channel axis; only valid
    output positions are produced (no garbage edge rows, no batch wrap)."""
    _, h, w, _ = x.shape
    ho = h - dilation * (k - 1)
    wo = w - dilation * (k - 1)
    taps = [x[:, dilation * kh:dilation * kh + ho,
              dilation * kw:dilation * kw + wo, :]
            for kh in range(k) for kw in range(k)]
    return jnp.concatenate(taps, axis=-1)


def _to_slab(a4, m_pad, dtype):
    """(N,H,W,C) -> (m_pad, 128): pad lanes once at the pallas_call boundary."""
    n, h, w, c = a4.shape
    a = a4.reshape(n * h * w, c)
    a = jnp.pad(a, ((0, m_pad - a.shape[0]), (0, _LANES - c)))
    return a.astype(dtype)


def _shift_prev(x, axis):
    first = lax.slice_in_dim(x, 0, 1, axis=axis)
    rest = lax.slice_in_dim(x, 0, x.shape[axis] - 1, axis=axis)
    return jnp.concatenate([first, rest], axis=axis)


def _shift_next(x, axis):
    rest = lax.slice_in_dim(x, 1, x.shape[axis], axis=axis)
    last = lax.slice_in_dim(x, x.shape[axis] - 1, x.shape[axis], axis=axis)
    return jnp.concatenate([rest, last], axis=axis)


def _interleave2x(ee, eo, oe, oo):
    n, h, w, c = ee.shape
    even_rows = jnp.stack([ee, eo], axis=3).reshape(n, h, 2 * w, c)
    odd_rows = jnp.stack([oe, oo], axis=3).reshape(n, h, 2 * w, c)
    return jnp.stack([even_rows, odd_rows], axis=2).reshape(n, 2 * h, 2 * w, c)


def _upsample2x(x):
    # TODO(synk): this pooled-path bilinear upsample (tiny 9x9 tensor) stays in
    # XLA; fusing it into the stage-3 kernel would need phase-dependent gathers.
    E = 0.75 * x + 0.25 * _shift_prev(x, 1)
    O = 0.75 * x + 0.25 * _shift_next(x, 1)
    ee = 0.75 * E + 0.25 * _shift_prev(E, 2)
    eo = 0.75 * E + 0.25 * _shift_next(E, 2)
    oe = 0.75 * O + 0.25 * _shift_prev(O, 2)
    oo = 0.75 * O + 0.25 * _shift_next(O, 2)
    return _interleave2x(ee, eo, oe, oo)


# ----------------------------------------------------------------------------
# parameters (deterministic, PyTorch-Conv2d-style uniform init)
# ----------------------------------------------------------------------------

def conv_params(key, k, cin, cout, groups=1):
    fan_in = (cin // groups) * k * k
    bound = 1.0 / math.sqrt(fan_in)
    kw_, kb_ = jax.random.split(key)
    if groups == 1:
        w = jax.random.uniform(kw_, (k, k, cin, cout), minval=-bound,
                               maxval=bound, dtype=jnp.float32)
    else:  # depthwise: groups == cin == cout
        w = jax.random.uniform(kw_, (k, k, cout), minval=-bound,
                               maxval=bound, dtype=jnp.float32)
    b = jax.random.uniform(kb_, (cout,), minval=-bound, maxval=bound,
                           dtype=jnp.float32)
    return w, b


def bn_params(c):
    return (jnp.ones((c,), jnp.float32), jnp.zeros((c,), jnp.float32),
            jnp.zeros((c,), jnp.float32), jnp.ones((c,), jnp.float32))


def init_params(key, in_c, out_c, k):
    bc = out_c // 4
    keys = jax.random.split(key, 8)
    p = {}
    p['conv_w'], p['conv_b'] = conv_params(keys[0], k, in_c, out_c)
    p['bn'] = bn_params(out_c)
    for i, name in enumerate(['dense', 'residual']):
        wb, bb = conv_params(keys[1 + i * 3], 1, out_c, bc)
        p[f'bneck_{name}_w'] = wb.reshape(out_c, bc)
        p[f'bneck_{name}_b'] = bb
        wd, bd = conv_params(keys[2 + i * 3], k, bc, bc, groups=bc)
        p[f'dw_{name}_w'] = wd.reshape(k * k, bc)
        p[f'dw_{name}_b'] = bd
        wp, bp = conv_params(keys[3 + i * 3], 1, bc, out_c)
        p[f'pw_{name}_w'] = wp.reshape(bc, out_c)
        p[f'pw_{name}_b'] = bp
        p[f'bn_{name}'] = bn_params(out_c)
    p['ws'] = jnp.ones((1, 2), jnp.float32)   # WeightedSum logits
    return p


def _fold_bn(w, b, bn, eps=1e-5):
    """Eval-mode BN folded into the preceding conv: w'=w*s, b'=b*s + beta - mean*s."""
    gamma, beta, mean, var = bn
    s = gamma / jnp.sqrt(var + eps)
    return w * s, b * s + beta - mean * s


# ----------------------------------------------------------------------------
# trace-time weight packing (BN folded, bottleneck/depthwise composed)
# ----------------------------------------------------------------------------

def _pack_weights(params, cin, cout, bch, k):
    taps = k * k

    # stage 1: conv3x3 (+BN) with the 1x1 bottlenecks composed into the taps
    wc, bc_ = _fold_bn(params['conv_w'], params['conv_b'], params['bn'])
    w_y = wc.reshape(taps * cin, cout)                          # (t*cin, cout)
    w_zd = w_y @ params['bneck_dense_w']                        # (t*cin, bch)
    w_zr = w_y @ params['bneck_residual_w']
    b_zd = bc_ @ params['bneck_dense_w'] + params['bneck_dense_b']
    b_zr = bc_ @ params['bneck_residual_w'] + params['bneck_residual_b']
    w1 = (jnp.zeros((_LANES, _LANES), jnp.float32)
          .at[:taps * cin, :cout].set(w_y)
          .at[:taps * cin, cout:cout + bch].set(w_zd)
          .at[:taps * cin, cout + bch:cout + 2 * bch].set(w_zr)
          .astype(jnp.bfloat16))
    b1 = (jnp.zeros((1, _LANES), jnp.float32)
          .at[0, :cout].set(bc_)
          .at[0, cout:cout + bch].set(b_zd)
          .at[0, cout + bch:cout + 2 * bch].set(b_zr))

    # stage 2: dilated depthwise composed into the pointwise (+BN), both branches
    wpd, bpd = _fold_bn(params['pw_dense_w'], params['pw_dense_b'], params['bn_dense'])
    wpr, bpr = _fold_bn(params['pw_residual_w'], params['pw_residual_b'],
                        params['bn_residual'])
    blk_d = params['dw_dense_w'][:, :, None] * wpd[None, :, :]      # (t, bch, cout)
    blk_r = params['dw_residual_w'][:, :, None] * wpr[None, :, :]
    tap_block = (jnp.zeros((taps, 2 * bch, 2 * cout), jnp.float32)
                 .at[:, :bch, :cout].set(blk_d)
                 .at[:, bch:, cout:].set(blk_r))
    w2 = (jnp.zeros((_LANES, _LANES), jnp.float32)
          .at[:taps * 2 * bch, :2 * cout]
          .set(tap_block.reshape(taps * 2 * bch, 2 * cout))
          .astype(jnp.bfloat16))
    b2 = (jnp.zeros((1, _LANES), jnp.float32)
          .at[0, :cout].set(params['dw_dense_b'] @ wpd + bpd)
          .at[0, cout:2 * cout].set(params['dw_residual_b'] @ wpr + bpr))
    return w1, b1, w2, b2


# bilinear-2x stencil (0.75/0.25, replicate-clamped) over the 3x3 taps producing
# planes [ee, eo, oe, oo]; tap order is (dH, dW) row-major with the centre at 4.
_STENCIL = jnp.array(
    [[0.0625, 0.1875, 0.0,    0.1875, 0.5625, 0.0,    0.0,    0.0,    0.0],
     [0.0,    0.1875, 0.0625, 0.0,    0.5625, 0.1875, 0.0,    0.0,    0.0],
     [0.0,    0.0,    0.0,    0.1875, 0.5625, 0.0,    0.0625, 0.1875, 0.0],
     [0.0,    0.0,    0.0,    0.0,    0.5625, 0.1875, 0.0,    0.1875, 0.0625]],
    jnp.float32)


def _pack_stage3_weights(cout, w0):
    eye = jnp.eye(cout, dtype=jnp.float32)
    blk = jnp.einsum('pt,ij->tipj', _STENCIL, eye) * w0          # w0 >= 0 (softmax)
    return (jnp.zeros((_LANES, _LANES), jnp.float32)
            .at[:9 * cout, :4 * cout].set(blk.reshape(9 * cout, 4 * cout))
            .astype(jnp.bfloat16))


# ----------------------------------------------------------------------------
# forward pass
# ----------------------------------------------------------------------------

def conv_block_forward(x_nchw, params, k=3, s=1, p=2, dilation=2):
    assert s == 1, "only stride-1 configuration implemented"
    # TODO(synk): reference DRNBlock(in_c,...) receives an out_c-channel input;
    # only consistent when in_c == out_c (shortcut = Identity), enforced here.
    x = jnp.transpose(x_nchw, (0, 2, 3, 1))                      # NCHW -> NHWC
    n, h, w, cin = x.shape
    cout = params['conv_w'].shape[-1]
    bch = cout // 4
    assert cin == cout
    # keeps every stage at the same resolution (the residual add requires it)
    assert 2 * p == dilation * (k - 1)

    h1, w1_ = h + 2 * p - (k - 1), w + 2 * p - (k - 1)           # = stage-2/3 res
    assert h1 % 2 == 0 and w1_ % 2 == 0, "2x pool/upsample fusion needs even dims"
    m = n * h1 * w1_
    tile = _pick_tile(m)
    m_pad = _round_up(m, tile)

    w1, b1, w2, b2 = _pack_weights(params, cin, cout, bch, k)

    # ---- stage 1: 3x3 conv (+BN) + composed 1x1 bottlenecks, one matmul ------
    # TODO(synk): reference has `self.bn(self.conv)`; the intended
    # `self.bn(self.conv(x))` is implemented (BN folded, eval mode).
    xp = jnp.pad(x, ((0, 0), (p, p), (p, p), (0, 0)))
    x1 = _to_slab(_tap_pack(xp, k, 1), m_pad, jnp.bfloat16)      # 72 real lanes
    s1 = _stage_mm(functools.partial(_s1_kernel, cout), x1, w1, b1,
                   m_pad, tile, jnp.bfloat16)

    s1v = s1[:m].reshape(n, h1, w1_, _LANES)
    y4 = s1v[..., :cout].astype(jnp.float32)                     # shortcut path
    z4 = s1v[..., cout:cout + 2 * bch]                           # bottleneck act (bf16)

    # ---- stage 2: dilated depthwise composed into pointwise (+BN, ReLU) ------
    zp = jnp.pad(z4, ((0, 0), (p, p), (p, p), (0, 0)))
    x2 = _to_slab(_tap_pack(zp, k, dilation), m_pad, jnp.bfloat16)   # 36 real lanes
    s2 = _stage_mm(_s2_kernel, x2, w2, b2, m_pad, tile, jnp.bfloat16)
    # TODO(synk): Dropout2d(0.2) is identity here (inference mode).

    s2v = s2[:m].reshape(n, h1, w1_, _LANES)
    dense4 = s2v[..., :cout].astype(jnp.float32)
    resid4 = s2v[..., cout:2 * cout].astype(jnp.float32)

    # ---- stage 3: MultiScaleFusion tail ---------------------------------------
    # TODO(synk): reference fusion mixes incompatible spatial resolutions;
    # repaired:  top_down  = maxpool2(upsample2x(residual)) + dense,
    #            bottom_up = upsample2x(maxpool2(dense))    + residual.
    wsoft = jax.nn.softmax(params['ws'].reshape(-1))
    w0, w1s = wsoft[0], wsoft[1]
    pooled = jnp.maximum(
        jnp.maximum(dense4[:, 0::2, 0::2, :], dense4[:, 0::2, 1::2, :]),
        jnp.maximum(dense4[:, 1::2, 0::2, :], dense4[:, 1::2, 1::2, :]))
    bu_up = _upsample2x(pooled)
    # all per-pixel linear terms of the weighted sum folded into one aux slab
    aux4 = w0 * dense4 + w1s * (bu_up + resid4) + y4
    aux = _to_slab(aux4, m_pad, jnp.float32)

    rpad = jnp.pad(resid4, ((0, 0), (1, 1), (1, 1), (0, 0)), mode='edge')
    r3 = _to_slab(_tap_pack(rpad, 3, 1), m_pad, jnp.bfloat16)    # 72 real lanes
    w3 = _pack_stage3_weights(cout, w0)                          # w0 folded in

    # TODO(synk): `self.bi_directional_fusion` does not exist in the reference;
    # the multi-scale-fused features are used directly; shortcut is Identity.
    fused = _stage_fuse(functools.partial(_s3_kernel, cout), aux, r3, w3,
                        m_pad, tile)

    out = fused[:m].reshape(n, h1, w1_, _LANES)[..., :cout]
    return jnp.transpose(out, (0, 3, 1, 2))                      # NHWC -> NCHW


# ----------------------------------------------------------------------------

if __name__ == "__main__":
    key = jax.random.PRNGKey(0)
    kx, kp = jax.random.split(key)
    in_c = out_c = 8          # in_c must equal out_c (see TODO above)
    k, s, p = 3, 1, 2         # padding=2 keeps the dilated depthwise conv shape-consistent
    x = jax.random.normal(kx, (2, in_c, 16, 16), dtype=jnp.float32)   # NCHW
    params = init_params(kp, in_c, out_c, k)

    fwd = jax.jit(functools.partial(conv_block_forward, k=k, s=s, p=p))
    out = jax.block_until_ready(fwd(x, params))
    assert out.shape == (2, out_c, 18, 18), out.shape
    assert bool(jnp.all(jnp.isfinite(out)))
    print("KERNEL_OK")
</pallas_src>

<mosaic_0001>
module attributes {stable_mosaic.version = 11 : i64} {
  func.func @_s1_kernel(%arg0: i32, %arg1: memref<168x128xbf16, #tpu.memory_space<vmem>>, %arg2: memref<128x128xbf16, #tpu.memory_space<vmem>>, %arg3: memref<1x128xf32, #tpu.memory_space<vmem>>, %arg4: memref<168x128xbf16, #tpu.memory_space<vmem>>) attributes {dimension_semantics = [#tpu.dimension_semantics<parallel>], iteration_bounds = array<i64: 4>, scalar_prefetch = 0 : i64, scratch_operands = 0 : i64, tpu.core_type = #tpu.core_type<tc>, window_params = [{transform_indices = @transform_0, window_bounds = array<i64: 168, 128>}, {pipeline_mode = #tpu.pipeline_mode<synchronous>, transform_indices = @transform_1, window_bounds = array<i64: 128, 128>}, {pipeline_mode = #tpu.pipeline_mode<synchronous>, transform_indices = @transform_2, window_bounds = array<i64: 1, 128>}, {transform_indices = @transform_3, window_bounds = array<i64: 168, 128>}]} {
    %c0 = arith.constant 0 : index
    %c0_0 = arith.constant 0 : index
    %0 = vector.load %arg1[%c0, %c0_0] : memref<168x128xbf16, #tpu.memory_space<vmem>>, vector<168x128xbf16>
    %c0_1 = arith.constant 0 : index
    %c0_2 = arith.constant 0 : index
    %1 = vector.load %arg2[%c0_1, %c0_2] : memref<128x128xbf16, #tpu.memory_space<vmem>>, vector<128x128xbf16>
    %cst = arith.constant dense<0.000000e+00> : vector<168x128xf32>
    %2 = tpu.matmul %0, %1, %cst {dimension_numbers = #tpu.dot_dimension_numbers<[1], [0], [0], [1], [0, 0, 1, 1], [], []>} : vector<168x128xbf16>, vector<128x128xbf16>, vector<168x128xf32> -> vector<168x128xf32>
    %c0_3 = arith.constant 0 : index
    %c0_4 = arith.constant 0 : index
    %3 = vector.load %arg3[%c0_3, %c0_4] : memref<1x128xf32, #tpu.memory_space<vmem>>, vector<1x128xf32>
    %4 = vector.broadcast %3 : vector<1x128xf32> to vector<168x128xf32>
    %5 = arith.addf %2, %4 : vector<168x128xf32>
    %6 = tpu.iota {dimensions = array<i32: 1>} : vector<168x128xi32>
    %c8_i32 = arith.constant 8 : i32
    %7 = vector.broadcast %c8_i32 : i32 to vector<168x128xi32>
    %8 = arith.cmpi slt, %6, %7 : vector<168x128xi32>
    %cst_5 = arith.constant 0.000000e+00 : f32
    %9 = vector.broadcast %cst_5 : f32 to vector<168x128xf32>
    %10 = arith.maximumf %5, %9 : vector<168x128xf32>
    %11 = arith.select %8, %5, %10 : vector<168x128xi1>, vector<168x128xf32>
    %12 = arith.truncf %11 : vector<168x128xf32> to vector<168x128xbf16>
    %c0_6 = arith.constant 0 : index
    %c0_7 = arith.constant 0 : index
    %13 = vector.load %arg4[%c0_6, %c0_7] : memref<168x128xbf16, #tpu.memory_space<vmem>>, vector<168x128xbf16>
    tpu.vector_store %arg4[%c0_6, %c0_7], %12 {strides = array<i32>} : memref<168x128xbf16, #tpu.memory_space<vmem>>, vector<168x128xbf16>,
    return
  }
  func.func @transform_0(%arg0: i32) -> (i32, i32) {
    %c0_i32 = arith.constant 0 : i32
    %c0_i32_0 = arith.constant 0 : i32
    return %arg0, %c0_i32 : i32, i32
  }
  func.func @transform_1(%arg0: i32) -> (i32, i32) {
    %c0_i32 = arith.constant 0 : i32
    %c0_i32_0 = arith.constant 0 : i32
    %c0_i32_1 = arith.constant 0 : i32
    return %c0_i32, %c0_i32_0 : i32, i32
  }
  func.func @transform_2(%arg0: i32) -> (i32, i32) {
    %c0_i32 = arith.constant 0 : i32
    %c0_i32_0 = arith.constant 0 : i32
    %c0_i32_1 = arith.constant 0 : i32
    return %c0_i32, %c0_i32_0 : i32, i32
  }
  func.func @transform_3(%arg0: i32) -> (i32, i32) {
    %c0_i32 = arith.constant 0 : i32
    %c0_i32_0 = arith.constant 0 : i32
    return %arg0, %c0_i32 : i32, i32
  }
}

module attributes {stable_mosaic.version = 11 : i64} {
  func.func @_s2_kernel(%arg0: i32, %arg1: memref<168x128xbf16, #tpu.memory_space<vmem>>, %arg2: memref<128x128xbf16, #tpu.memory_space<vmem>>, %arg3: memref<1x128xf32, #tpu.memory_space<vmem>>, %arg4: memref<168x128xbf16, #tpu.memory_space<vmem>>) attributes {dimension_semantics = [#tpu.dimension_semantics<parallel>], iteration_bounds = array<i64: 4>, scalar_prefetch = 0 : i64, scratch_operands = 0 : i64, tpu.core_type = #tpu.core_type<tc>, window_params = [{transform_indices = @transform_0, window_bounds = array<i64: 168, 128>}, {pipeline_mode = #tpu.pipeline_mode<synchronous>, transform_indices = @transform_1, window_bounds = array<i64: 128, 128>}, {pipeline_mode = #tpu.pipeline_mode<synchronous>, transform_indices = @transform_2, window_bounds = array<i64: 1, 128>}, {transform_indices = @transform_3, window_bounds = array<i64: 168, 128>}]} {
    %c0 = arith.constant 0 : index
    %c0_0 = arith.constant 0 : index
    %0 = vector.load %arg1[%c0, %c0_0] : memref<168x128xbf16, #tpu.memory_space<vmem>>, vector<168x128xbf16>
    %c0_1 = arith.constant 0 : index
    %c0_2 = arith.constant 0 : index
    %1 = vector.load %arg2[%c0_1, %c0_2] : memref<128x128xbf16, #tpu.memory_space<vmem>>, vector<128x128xbf16>
    %cst = arith.constant dense<0.000000e+00> : vector<168x128xf32>
    %2 = tpu.matmul %0, %1, %cst {dimension_numbers = #tpu.dot_dimension_numbers<[1], [0], [0], [1], [0, 0, 1, 1], [], []>} : vector<168x128xbf16>, vector<128x128xbf16>, vector<168x128xf32> -> vector<168x128xf32>
    %c0_3 = arith.constant 0 : index
    %c0_4 = arith.constant 0 : index
    %3 = vector.load %arg3[%c0_3, %c0_4] : memref<1x128xf32, #tpu.memory_space<vmem>>, vector<1x128xf32>
    %4 = vector.broadcast %3 : vector<1x128xf32> to vector<168x128xf32>
    %5 = arith.addf %2, %4 : vector<168x128xf32>
    %cst_5 = arith.constant 0.000000e+00 : f32
    %6 = vector.broadcast %cst_5 : f32 to vector<168x128xf32>
    %7 = arith.maximumf %5, %6 : vector<168x128xf32>
    %8 = arith.truncf %7 : vector<168x128xf32> to vector<168x128xbf16>
    %c0_6 = arith.constant 0 : index
    %c0_7 = arith.constant 0 : index
    %9 = vector.load %arg4[%c0_6, %c0_7] : memref<168x128xbf16, #tpu.memory_space<vmem>>, vector<168x128xbf16>
    tpu.vector_store %arg4[%c0_6, %c0_7], %8 {strides = array<i32>} : memref<168x128xbf16, #tpu.memory_space<vmem>>, vector<168x128xbf16>,
    return
  }
  func.func @transform_0(%arg0: i32) -> (i32, i32) {
    %c0_i32 = arith.constant 0 : i32
    %c0_i32_0 = arith.constant 0 : i32
    return %arg0, %c0_i32 : i32, i32
  }
  func.func @transform_1(%arg0: i32) -> (i32, i32) {
    %c0_i32 = arith.constant 0 : i32
    %c0_i32_0 = arith.constant 0 : i32
    %c0_i32_1 = arith.constant 0 : i32
    return %c0_i32, %c0_i32_0 : i32, i32
  }
  func.func @transform_2(%arg0: i32) -> (i32, i32) {
    %c0_i32 = arith.constant 0 : i32
    %c0_i32_0 = arith.constant 0 : i32
    %c0_i32_1 = arith.constant 0 : i32
    return %c0_i32, %c0_i32_0 : i32, i32
  }
  func.func @transform_3(%arg0: i32) -> (i32, i32) {
    %c0_i32 = arith.constant 0 : i32
    %c0_i32_0 = arith.constant 0 : i32
    return %arg0, %c0_i32 : i32, i32
  }
}

module attributes {stable_mosaic.version = 11 : i64} {
  func.func @_s3_kernel(%arg0: i32, %arg1: memref<168x128xf32, #tpu.memory_space<vmem>>, %arg2: memref<168x128xbf16, #tpu.memory_space<vmem>>, %arg3: memref<128x128xbf16, #tpu.memory_space<vmem>>, %arg4: memref<168x128xf32, #tpu.memory_space<vmem>>) attributes {dimension_semantics = [#tpu.dimension_semantics<parallel>], iteration_bounds = array<i64: 4>, scalar_prefetch = 0 : i64, scratch_operands = 0 : i64, tpu.core_type = #tpu.core_type<tc>, window_params = [{transform_indices = @transform_0, window_bounds = array<i64: 168, 128>}, {transform_indices = @transform_1, window_bounds = array<i64: 168, 128>}, {pipeline_mode = #tpu.pipeline_mode<synchronous>, transform_indices = @transform_2, window_bounds = array<i64: 128, 128>}, {transform_indices = @transform_3, window_bounds = array<i64: 168, 128>}]} {
    %c0 = arith.constant 0 : index
    %c0_0 = arith.constant 0 : index
    %0 = vector.load %arg2[%c0, %c0_0] : memref<168x128xbf16, #tpu.memory_space<vmem>>, vector<168x128xbf16>
    %c0_1 = arith.constant 0 : index
    %c0_2 = arith.constant 0 : index
    %1 = vector.load %arg3[%c0_1, %c0_2] : memref<128x128xbf16, #tpu.memory_space<vmem>>, vector<128x128xbf16>
    %cst = arith.constant dense<0.000000e+00> : vector<168x128xf32>
    %2 = tpu.matmul %0, %1, %cst {dimension_numbers = #tpu.dot_dimension_numbers<[1], [0], [0], [1], [0, 0, 1, 1], [], []>} : vector<168x128xbf16>, vector<128x128xbf16>, vector<168x128xf32> -> vector<168x128xf32>
    %c120_i32 = arith.constant 120 : i32
    %3 = tpu.dynamic_rotate %2 by %c120_i32 dim 1 : vector<168x128xf32>, i32 -> vector<168x128xf32>
    %4 = arith.maximumf %2, %3 : vector<168x128xf32>
    %c112_i32 = arith.constant 112 : i32
    %5 = tpu.dynamic_rotate %4 by %c112_i32 dim 1 : vector<168x128xf32>, i32 -> vector<168x128xf32>
    %6 = arith.maximumf %4, %5 : vector<168x128xf32>
    %c0_3 = arith.constant 0 : index
    %c0_4 = arith.constant 0 : index
    %7 = vector.load %arg1[%c0_3, %c0_4] : memref<168x128xf32, #tpu.memory_space<vmem>>, vector<168x128xf32>
    %8 = arith.addf %6, %7 : vector<168x128xf32>
    %cst_5 = arith.constant 0.000000e+00 : f32
    %9 = vector.broadcast %cst_5 : f32 to vector<168x128xf32>
    %10 = arith.maximumf %8, %9 : vector<168x128xf32>
    %c0_6 = arith.constant 0 : index
    %c0_7 = arith.constant 0 : index
    %11 = vector.load %arg4[%c0_6, %c0_7] : memref<168x128xf32, #tpu.memory_space<vmem>>, vector<168x128xf32>
    tpu.vector_store %arg4[%c0_6, %c0_7], %10 {strides = array<i32>} : memref<168x128xf32, #tpu.memory_space<vmem>>, vector<168x128xf32>,
    return
  }
  func.func @transform_0(%arg0: i32) -> (i32, i32) {
    %c0_i32 = arith.constant 0 : i32
    %c0_i32_0 = arith.constant 0 : i32
    return %arg0, %c0_i32 : i32, i32
  }
  func.func @transform_1(%arg0: i32) -> (i32, i32) {
    %c0_i32 = arith.constant 0 : i32
    %c0_i32_0 = arith.constant 0 : i32
    return %arg0, %c0_i32 : i32, i32
  }
  func.func @transform_2(%arg0: i32) -> (i32, i32) {
    %c0_i32 = arith.constant 0 : i32
    %c0_i32_0 = arith.constant 0 : i32
    %c0_i32_1 = arith.constant 0 : i32
    return %c0_i32, %c0_i32_0 : i32, i32
  }
  func.func @transform_3(%arg0: i32) -> (i32, i32) {
    %c0_i32 = arith.constant 0 : i32
    %c0_i32_0 = arith.constant 0 : i32
    return %arg0, %c0_i32 : i32, i32
  }
}

</mosaic_0001>

<bundles_post_ra>
// kernel: conv_block_forward.3
= control target key start
LH: loop header
LB: loop body
LE: loop exit
PB: predicated region body
PF: predicated region fallthrough
CT: control target
= control target key end

     0   :  { %s942_s12 = smov 0   ;;  %s1125_s0 = inlined_call_operand.vmem [shape: bf16[672,128], index: 0, kind: input, shape index: {}]   ;;  %s1126_s1 = inlined_call_operand.vmem [shape: bf16[128,128], index: 1, kind: input, shape index: {}]   ;;  %s1127_s2 = inlined_call_operand.vmem [shape: f32[1,128], index: 2, kind: input, shape index: {}]   ;;  %s1128_s3 = inlined_call_operand.vmem [shape: bf16[672,128], index: 3, kind: output, shape index: {}]  }
   0x1 LB: > { %s658_s13 = sadd.s32 4294967295, %s918_s12   ;;  %p662_p0 = scmp.ge.s32.totalorder %s918_s12, 1  ;;  %s918_s12 = sphi %s942_s12, %s13_s12  }
   0x2   : > { %p138_p1 = scmp.lt.s32.totalorder %s918_s12, 5 }
   0x4   : > { %p139_p2 = pnand %p662_p0, %p138_p1 }
   0x5   : > { %v893_v0 = vld [vmem:[%s1126_s1] sm:$0xff] (!%p139_p2)   ;;  %v920_v1 = vmov (!%p139_p2), 0.0   ;;  %v894_v2 = vld [vmem:[%s1126_s1 + $0x8] sm:$0xff] (!%p139_p2)   ;;  %s162_s18 = smul.u32 (!%p139_p2), 21, %s658_s13  ;;  %vm921_vm0 = vmmov (!%p139_p2), 0   ;;  %v895_v3 = vld [vmem:[%s1126_s1 + $0x10] sm:$0xff] (!%p139_p2)   ;;  %v451_v20 = vlaneseq (!%p139_p2) }
   0x6   : > { %142 = sbr.rel (%p139_p2) target bundleno = 300 (0x12c), region = 32  ;;  %807 = vmatprep.subr.bf16.mxu0 (!%p139_p2), %v920_v1  ;;  %867 = vmatprep.subr.bf16.mxu1 (!%p139_p2), %v920_v1  ;;  %v896_v4 = vld [vmem:[%s1126_s1 + $0x18] sm:$0xff] (!%p139_p2)   ;;  %v897_v5 = vld [vmem:[%s1126_s1 + $0x20] sm:$0xff] (!%p139_p2)   ;;  %v898_v6 = vld [vmem:[%s1126_s1 + $0x28] sm:$0xff] (!%p139_p2)  }
   0x7   : > { %808 = vmatpush3.bf16.msra.mxu0 (!%p139_p2), %v893_v0  ;;  %875 = vmatpush3.bf16.msra.mxu1 (!%p139_p2), %v893_v0  ;;  %p163_p3 = scmp.lt.s32.totalorder (!%p139_p2), %s162_s18, 83  ;;  %v899_v7 = vld [vmem:[%s1126_s1 + $0x30] sm:$0xff] (!%p139_p2)   ;;  %v900_v8 = vld [vmem:[%s1126_s1 + $0x38] sm:$0xff] (!%p139_p2)   ;;  %v1036_v21 = vld [vmem:[%s1127_s2] ss:$0 sm:$0xff] (!%p139_p2)  ;;  %v1038_v23 = vand.u32 (!%p139_p2), 127, %v451_v20 }
   0x8   : > { %809 = vmatprep.subr.bf16.mxu0 (!%p139_p2), %v920_v1  ;;  %868 = vmatprep.subr.bf16.mxu1 (!%p139_p2), %v920_v1 }
   0x9   : > { %823 = vmatprep.mubr.msk.bf16.mxu0 (!%p139_p2), %vm921_vm0, %v920_v1  ;;  %847 = vmatprep.mubr.msk.bf16.mxu1 (!%p139_p2), %vm921_vm0, %v920_v1  ;;  %vm453_vm1 = vcmp.lt.s32.totalorder (!%p139_p2), %v1038_v23, 8 }
   0xb   : > { %810 = vmatpush3.bf16.msra.mxu0 (!%p139_p2), %v894_v2  ;;  %876 = vmatpush3.bf16.msra.mxu1 (!%p139_p2), %v894_v2 }
   0xc   : > { %811 = vmatprep.subr.bf16.mxu0 (!%p139_p2), %v920_v1  ;;  %869 = vmatprep.subr.bf16.mxu1 (!%p139_p2), %v920_v1 }
   0xd   : > { %s1130_s18 = smov (!%p163_p3, %s162_s18), 83 }
   0xe   : > { %s663_s21 = sshll.u32 %s1130_s18, 2 }
   0xf   : > { %s977_s24 = scalar_lea.vmem %s1125_s0, %s663_s21  ;;  %812 = vmatpush3.bf16.msra.mxu0 %v895_v3  ;;  %877 = vmatpush3.bf16.msra.mxu1 %v895_v3  ;;  %s1054_s13 = scalar_lea.vmem %s1128_s3, %s663_s21 }
  0x10   : > { %813 = vmatprep.subr.bf16.mxu0 %v920_v1  ;;  %870 = vmatprep.subr.bf16.mxu1 %v920_v1  ;;  %v901_v9 = vld [vmem:[%s977_s24] sm:$0xff]   ;;  %v902_v10 = vld [vmem:[%s977_s24 + $0x30] sm:$0xff]   ;;  %v903_v11 = vld [vmem:[%s977_s24 + $0x8] sm:$0xff]  }
  0x11   : > { %v904_v12 = vld [vmem:[%s977_s24 + $0x38] sm:$0xff]   ;;  %v905_v13 = vld [vmem:[%s977_s24 + $0x10] sm:$0xff]   ;;  %v906_v14 = vld [vmem:[%s977_s24 + $0x40] sm:$0xff]  }
  0x12   : > { %v907_v15 = vld [vmem:[%s977_s24 + $0x18] sm:$0xff]   ;;  %v908_v16 = vld [vmem:[%s977_s24 + $0x48] sm:$0xff]   ;;  %v909_v17 = vld [vmem:[%s977_s24 + $0x20] sm:$0xff]  }
  0x13   : > { %814 = vmatpush3.bf16.msra.mxu0 %v896_v4  ;;  %878 = vmatpush3.bf16.msra.mxu1 %v896_v4  ;;  %v910_v18 = vld [vmem:[%s977_s24 + $0x50] ss:$0 sps:$4 sm:$0xff]   ;;  %v911_v19 = vld [vmem:[%s977_s24 + $0x28] sm:$0xff]  }
  0x14   : > { %815 = vmatprep.subr.bf16.mxu0 %v920_v1  ;;  %871 = vmatprep.subr.bf16.mxu1 %v920_v1 }
  0x17   : > { %816 = vmatpush3.bf16.msra.mxu0 %v897_v5  ;;  %879 = vmatpush3.bf16.msra.mxu1 %v897_v5 }
  0x18   : > { %817 = vmatprep.subr.bf16.mxu0 %v920_v1  ;;  %872 = vmatprep.subr.bf16.mxu1 %v920_v1 }
  0x1b   : > { %818 = vmatpush3.bf16.msra.mxu0 %v898_v6  ;;  %880 = vmatpush3.bf16.msra.mxu1 %v898_v6 }
  0x1c   : > { %819 = vmatprep.subr.bf16.mxu0 %v920_v1  ;;  %873 = vmatprep.subr.bf16.mxu1 %v920_v1 }
  0x1f   : > { %820 = vmatpush3.bf16.msra.mxu0 %v899_v7  ;;  %881 = vmatpush3.bf16.msra.mxu1 %v899_v7 }
  0x20   : > { %821 = vmatprep.subr.bf16.mxu0 %v920_v1  ;;  %874 = vmatprep.subr.bf16.mxu1 %v920_v1 }
  0x23   : > { %822 = vmatpush3.bf16.msra.mxu0 %v900_v8  ;;  %882 = vmatpush3.bf16.msra.mxu1 %v900_v8 }
  0x26   : > { %824 = vmatmul.mubr.bf16.vlgmr.msra.gmra.mrb[0].mxu0 %v901_v9  ;;  %848 = vmatmul.mubr.bf16.vlgmr.msra.gmra.mrb[0].mxu1 %v902_v10 }
  0x27   : > { %827 = vmatprep.mubr.msk.bf16.mxu0 %vm921_vm0, %v920_v1  ;;  %851 = vmatprep.mubr.msk.bf16.mxu1 %vm921_vm0, %v920_v1 }
  0x2e   : > { %828 = vmatmul.mubr.bf16.gmra.mrb[4].mxu0 %v903_v11  ;;  %852 = vmatmul.mubr.bf16.gmra.mrb[4].mxu1 %v904_v12 }
  0x2f   : > { %831 = vmatprep.mubr.msk.bf16.mxu0 %vm921_vm0, %v920_v1  ;;  %855 = vmatprep.mubr.msk.bf16.mxu1 %vm921_vm0, %v920_v1 }
  0x36   : > { %832 = vmatmul.mubr.bf16.gmra.mrb[8].mxu0 %v905_v13  ;;  %856 = vmatmul.mubr.bf16.gmra.mrb[8].mxu1 %v906_v14 }
  0x37   : > { %835 = vmatprep.mubr.msk.bf16.mxu0 %vm921_vm0, %v920_v1  ;;  %859 = vmatprep.mubr.msk.bf16.mxu1 %vm921_vm0, %v920_v1 }
  0x3e   : > { %836 = vmatmul.mubr.bf16.gmra.mrb[12].mxu0 %v907_v15  ;;  %860 = vmatmul.mubr.bf16.gmra.mrb[12].mxu1 %v908_v16 }
  0x3f   : > { %839 = vmatprep.mubr.msk.bf16.mxu0 %vm921_vm0, %v920_v1  ;;  %863 = vmatprep.mubr.msk.bf16.mxu1 %vm921_vm0, %v920_v1 }
  0x46   : > { %840 = vmatmul.mubr.bf16.gmra.mrb[16].mxu0 %v909_v17  ;;  %864 = vmatmul.mubr.bf16.gmra.mrb[16].mxu1 %v910_v18 }
  0x47   : > { %843 = vmatprep.mubr.msk.bf16.mxu0 %vm921_vm0, %v920_v1 }
  0x4e   : > { %844 = vmatmul.mubr.bf16.gmra.mrb[20].mxu0 %v911_v19 }
  0xf9   : > { %v365_v22 = vpop.f32.mrb[0].mxu0  ;;  %v413_v24 = vpop.f32.mrb[0].mxu1 }
  0xfa   : > { %v366_v25 = vadd.f32 %v1036_v21, %v365_v22  ;;  %v825_v26 = vpop.f32.mrb[1].mxu0  ;;  %v414_v27 = vadd.f32 %v1036_v21, %v413_v24  ;;  %v849_v28 = vpop.f32.mrb[1].mxu1 }
  0xfb   : > { %v368_v29 = vpop.f32.mrb[2].mxu0  ;;  %v416_v30 = vpop.f32.mrb[2].mxu1 }
  0xfc   : > { %v454_v31 = vmax.f32 %v366_v25, 0.0  ;;  %v369_v32 = vadd.f32 %v1036_v21, %v368_v29  ;;  %v826_v33 = vpop.f32.mrb[3].mxu0  ;;  %v466_v34 = vmax.f32 %v414_v27, 0.0  ;;  %v417_v35 = vadd.f32 %v1036_v21, %v416_v30  ;;  %v850_v36 = vpop.f32.mrb[3].mxu1 }
  0xfe   : > { %v455_v37 = vmax.f32 %v369_v32, 0.0  ;;  %v487_v38 = vsel %vm453_vm1, %v414_v27, %v466_v34  ;;  %v467_v39 = vmax.f32 %v417_v35, 0.0  ;;  %v475_v40 = vsel %vm453_vm1, %v366_v25, %v454_v31 }
 0x100   : > { %v476_v41 = vsel %vm453_vm1, %v369_v32, %v455_v37  ;;  %v488_v42 = vsel %vm453_vm1, %v417_v35, %v467_v39 }
 0x101   : > { %v732_v43 = vpack.c.bf16 %v476_v41, %v475_v40  ;;  %v373_v44 = vpop.f32.mrb[4].mxu0  ;;  %v762_v45 = vpack.c.bf16 %v488_v42, %v487_v38  ;;  %v421_v46 = vpop.f32.mrb[4].mxu1 }
 0x102   : > { %v374_v47 = vadd.f32 %v1036_v21, %v373_v44  ;;  %v829_v48 = vpop.f32.mrb[5].mxu0  ;;  %v422_v49 = vadd.f32 %v1036_v21, %v421_v46  ;;  %v853_v50 = vpop.f32.mrb[5].mxu1 }
 0x103   : > { %733 = vst [vmem:[%s1054_s13] sm:$0xff] %v732_v43   ;;  %784 = vst [vmem:[%s1054_s13 + $0x30] sm:$0xff] %v762_v45   ;;  %v376_v51 = vpop.f32.mrb[6].mxu0  ;;  %v424_v52 = vpop.f32.mrb[6].mxu1 }
 0x104   : > { %v456_v53 = vmax.f32 %v374_v47, 0.0  ;;  %v377_v54 = vadd.f32 %v1036_v21, %v376_v51  ;;  %v830_v55 = vpop.f32.mrb[7].mxu0  ;;  %v468_v56 = vmax.f32 %v422_v49, 0.0  ;;  %v425_v57 = vadd.f32 %v1036_v21, %v424_v52  ;;  %v854_v58 = vpop.f32.mrb[7].mxu1 }
 0x106   : > { %v457_v59 = vmax.f32 %v377_v54, 0.0  ;;  %v489_v60 = vsel %vm453_vm1, %v422_v49, %v468_v56  ;;  %v469_v61 = vmax.f32 %v425_v57, 0.0  ;;  %v477_v62 = vsel %vm453_vm1, %v374_v47, %v456_v53 }
 0x108   : > { %v478_v63 = vsel %vm453_vm1, %v377_v54, %v457_v59  ;;  %v490_v0 = vsel %vm453_vm1, %v425_v57, %v469_v61 }
 0x109   : > { %v737_v1 = vpack.c.bf16 %v478_v63, %v477_v62  ;;  %v381_v2 = vpop.f32.mrb[8].mxu0  ;;  %v767_v3 = vpack.c.bf16 %v490_v0, %v489_v60  ;;  %v429_v4 = vpop.f32.mrb[8].mxu1 }
 0x10a   : > { %v382_v5 = vadd.f32 %v1036_v21, %v381_v2  ;;  %v833_v6 = vpop.f32.mrb[9].mxu0  ;;  %v430_v7 = vadd.f32 %v1036_v21, %v429_v4  ;;  %v857_v8 = vpop.f32.mrb[9].mxu1 }
 0x10b   : > { %779 = vst [vmem:[%s1054_s13 + $0x8] sm:$0xff] %v737_v1   ;;  %785 = vst [vmem:[%s1054_s13 + $0x38] sm:$0xff] %v767_v3   ;;  %v384_v9 = vpop.f32.mrb[10].mxu0  ;;  %v432_v10 = vpop.f32.mrb[10].mxu1 }
 0x10c   : > { %v458_v11 = vmax.f32 %v382_v5, 0.0  ;;  %v385_v12 = vadd.f32 %v1036_v21, %v384_v9  ;;  %v834_v13 = vpop.f32.mrb[11].mxu0  ;;  %v470_v14 = vmax.f32 %v430_v7, 0.0  ;;  %v433_v15 = vadd.f32 %v1036_v21, %v432_v10  ;;  %v858_v16 = vpop.f32.mrb[11].mxu1 }
 0x10e   : > { %v459_v17 = vmax.f32 %v385_v12, 0.0  ;;  %v491_v18 = vsel %vm453_vm1, %v430_v7, %v470_v14  ;;  %v471_v19 = vmax.f32 %v433_v15, 0.0  ;;  %v479_v20 = vsel %vm453_vm1, %v382_v5, %v458_v11 }
 0x110   : > { %v480_v22 = vsel %vm453_vm1, %v385_v12, %v459_v17  ;;  %v492_v24 = vsel %vm453_vm1, %v433_v15, %v471_v19 }
 0x111   : > { %v742_v25 = vpack.c.bf16 %v480_v22, %v479_v20  ;;  %v389_v26 = vpop.f32.mrb[12].mxu0  ;;  %v772_v27 = vpack.c.bf16 %v492_v24, %v491_v18  ;;  %v437_v28 = vpop.f32.mrb[12].mxu1 }
 0x112   : > { %v390_v29 = vadd.f32 %v1036_v21, %v389_v26  ;;  %v837_v30 = vpop.f32.mrb[13].mxu0  ;;  %v438_v31 = vadd.f32 %v1036_v21, %v437_v28  ;;  %v861_v32 = vpop.f32.mrb[13].mxu1 }
 0x113   : > { %780 = vst [vmem:[%s1054_s13 + $0x10] sm:$0xff] %v742_v25   ;;  %786 = vst [vmem:[%s1054_s13 + $0x40] sm:$0xff] %v772_v27   ;;  %v392_v33 = vpop.f32.mrb[14].mxu0  ;;  %v440_v34 = vpop.f32.mrb[14].mxu1 }
 0x114   : > { %v460_v35 = vmax.f32 %v390_v29, 0.0  ;;  %v393_v36 = vadd.f32 %v1036_v21, %v392_v33  ;;  %v838_v37 = vpop.f32.mrb[15].mxu0  ;;  %v472_v38 = vmax.f32 %v438_v31, 0.0  ;;  %v441_v39 = vadd.f32 %v1036_v21, %v440_v34  ;;  %v862_v40 = vpop.f32.mrb[15].mxu1 }
 0x116   : > { %v461_v41 = vmax.f32 %v393_v36, 0.0  ;;  %v493_v42 = vsel %vm453_vm1, %v438_v31, %v472_v38  ;;  %v473_v43 = vmax.f32 %v441_v39, 0.0  ;;  %v481_v44 = vsel %vm453_vm1, %v390_v29, %v460_v35 }
 0x118   : > { %v482_v45 = vsel %vm453_vm1, %v393_v36, %v461_v41  ;;  %v494_v46 = vsel %vm453_vm1, %v441_v39, %v473_v43 }
 0x119   : > { %v747_v47 = vpack.c.bf16 %v482_v45, %v481_v44  ;;  %v397_v48 = vpop.f32.mrb[16].mxu0  ;;  %v777_v49 = vpack.c.bf16 %v494_v46, %v493_v42  ;;  %v445_v50 = vpop.f32.mrb[16].mxu1 }
 0x11a   : > { %v398_v51 = vadd.f32 %v1036_v21, %v397_v48  ;;  %v841_v52 = vpop.f32.mrb[17].mxu0  ;;  %v446_v53 = vadd.f32 %v1036_v21, %v445_v50  ;;  %v865_v54 = vpop.f32.mrb[17].mxu1 }
 0x11b   : > { %781 = vst [vmem:[%s1054_s13 + $0x18] sm:$0xff] %v747_v47   ;;  %787 = vst [vmem:[%s1054_s13 + $0x48] sm:$0xff] %v777_v49   ;;  %v400_v55 = vpop.f32.mrb[18].mxu0  ;;  %v448_v56 = vpop.f32.mrb[18].mxu1 }
 0x11c   : > { %v462_v57 = vmax.f32 %v398_v51, 0.0  ;;  %v401_v58 = vadd.f32 %v1036_v21, %v400_v55  ;;  %v842_v59 = vpop.f32.mrb[19].mxu0  ;;  %v474_v60 = vmax.f32 %v446_v53, 0.0  ;;  %v866_v61 = vpop.f32.mrb[19].mxu1 }
 0x11e   : > { %v463_v62 = vmax.f32 %v401_v58, 0.0  ;;  %v495_v63 = vsel %vm453_vm1, %v446_v53, %v474_v60  ;;  %v483_v1 = vsel %vm453_vm1, %v398_v51, %v462_v57 }
 0x11f   : > { %v728_v0 = vpack.c.bf16 %v495_v63, %v495_v63 }
 0x120   : > { %v484_v2 = vsel %vm453_vm1, %v401_v58, %v463_v62 }
 0x121   : > { %v752_v3 = vpack.c.bf16 %v484_v2, %v483_v1  ;;  %601 = vst [vmem:[%s1054_s13 + $0x50] sm:$0xf] %v728_v0  ;;  %v405_v4 = vpop.f32.mrb[20].mxu0 }
 0x122   : > { %v406_v5 = vadd.f32 %v1036_v21, %v405_v4  ;;  %v845_v6 = vpop.f32.mrb[21].mxu0 }
 0x123   : > { %782 = vst [vmem:[%s1054_s13 + $0x20] sm:$0xff] %v752_v3   ;;  %v408_v7 = vpop.f32.mrb[22].mxu0 }
 0x124   : > { %v464_v8 = vmax.f32 %v406_v5, 0.0  ;;  %v409_v9 = vadd.f32 %v1036_v21, %v408_v7  ;;  %v846_v10 = vpop.f32.mrb[23].mxu0 }
 0x126   : > { %v465_v11 = vmax.f32 %v409_v9, 0.0  ;;  %v485_v12 = vsel %vm453_vm1, %v406_v5, %v464_v8 }
 0x128   : > { %v486_v13 = vsel %vm453_vm1, %v409_v9, %v465_v11 }
 0x129   : > { %v757_v14 = vpack.c.bf16 %v486_v13, %v485_v12 }
 0x12b   : > { %783 = vst [vmem:[%s1054_s13 + $0x28] sm:$0xff] %v757_v14  }
 0x12c PF: > { %s13_s12 = sadd.s32 1, %s918_s12  }
 0x12d   : > { %p10_p4 = scmp.ge.s32.totalorder %s13_s12, 6  }
 0x12f   :  { %12 = sbr.rel (!%p10_p4) target bundleno = 1 (0x1), region = 62 }

// kernel: conv_block_forward.4
= control target key start
LH: loop header
LB: loop body
LE: loop exit
PB: predicated region body
PF: predicated region fallthrough
CT: control target
= control target key end

     0   :  { %s918_s12 = smov 0   ;;  %s1056_s0 = inlined_call_operand.vmem [shape: bf16[672,128], index: 0, kind: input, shape index: {}]   ;;  %s1057_s1 = inlined_call_operand.vmem [shape: bf16[128,128], index: 1, kind: input, shape index: {}]   ;;  %s1058_s2 = inlined_call_operand.vmem [shape: f32[1,128], index: 2, kind: input, shape index: {}]   ;;  %s1059_s3 = inlined_call_operand.vmem [shape: bf16[672,128], index: 3, kind: output, shape index: {}]  }
   0x1 LB: > { %s634_s13 = sadd.s32 4294967295, %s894_s12   ;;  %p638_p0 = scmp.ge.s32.totalorder %s894_s12, 1  ;;  %s894_s12 = sphi %s918_s12, %s13_s12  }
   0x2   : > { %p138_p1 = scmp.lt.s32.totalorder %s894_s12, 5 }
   0x4   : > { %p139_p2 = pnand %p638_p0, %p138_p1 }
   0x5   : > { %v869_v0 = vld [vmem:[%s1057_s1] sm:$0xff] (!%p139_p2)   ;;  %v896_v1 = vmov (!%p139_p2), 0.0   ;;  %v870_v2 = vld [vmem:[%s1057_s1 + $0x8] sm:$0xff] (!%p139_p2)   ;;  %s162_s18 = smul.u32 (!%p139_p2), 21, %s634_s13  ;;  %vm897_vm0 = vmmov (!%p139_p2), 0   ;;  %v871_v3 = vld [vmem:[%s1057_s1 + $0x10] sm:$0xff] (!%p139_p2)  }
   0x6   : > { %142 = sbr.rel (%p139_p2) target bundleno = 299 (0x12b), region = 32  ;;  %783 = vmatprep.subr.bf16.mxu0 (!%p139_p2), %v896_v1  ;;  %843 = vmatprep.subr.bf16.mxu1 (!%p139_p2), %v896_v1  ;;  %v872_v4 = vld [vmem:[%s1057_s1 + $0x18] sm:$0xff] (!%p139_p2)   ;;  %v873_v5 = vld [vmem:[%s1057_s1 + $0x20] sm:$0xff] (!%p139_p2)   ;;  %v874_v6 = vld [vmem:[%s1057_s1 + $0x28] sm:$0xff] (!%p139_p2)  }
   0x7   : > { %784 = vmatpush3.bf16.msra.mxu0 (!%p139_p2), %v869_v0  ;;  %851 = vmatpush3.bf16.msra.mxu1 (!%p139_p2), %v869_v0  ;;  %p163_p3 = scmp.lt.s32.totalorder (!%p139_p2), %s162_s18, 83  ;;  %v875_v7 = vld [vmem:[%s1057_s1 + $0x30] sm:$0xff] (!%p139_p2)   ;;  %v876_v8 = vld [vmem:[%s1057_s1 + $0x38] sm:$0xff] (!%p139_p2)   ;;  %v1012_v20 = vld [vmem:[%s1058_s2] ss:$0 sm:$0xff] (!%p139_p2) }
   0x8   : > { %785 = vmatprep.subr.bf16.mxu0 (!%p139_p2), %v896_v1  ;;  %844 = vmatprep.subr.bf16.mxu1 (!%p139_p2), %v896_v1 }
   0x9   : > { %799 = vmatprep.mubr.msk.bf16.mxu0 (!%p139_p2), %vm897_vm0, %v896_v1  ;;  %823 = vmatprep.mubr.msk.bf16.mxu1 (!%p139_p2), %vm897_vm0, %v896_v1 }
   0xb   : > { %786 = vmatpush3.bf16.msra.mxu0 (!%p139_p2), %v870_v2  ;;  %852 = vmatpush3.bf16.msra.mxu1 (!%p139_p2), %v870_v2 }
   0xc   : > { %787 = vmatprep.subr.bf16.mxu0 (!%p139_p2), %v896_v1  ;;  %845 = vmatprep.subr.bf16.mxu1 (!%p139_p2), %v896_v1 }
   0xd   : > { %s1061_s18 = smov (!%p163_p3, %s162_s18), 83 }
   0xe   : > { %s639_s21 = sshll.u32 %s1061_s18, 2 }
   0xf   : > { %s953_s24 = scalar_lea.vmem %s1056_s0, %s639_s21  ;;  %788 = vmatpush3.bf16.msra.mxu0 %v871_v3  ;;  %853 = vmatpush3.bf16.msra.mxu1 %v871_v3  ;;  %s1023_s13 = scalar_lea.vmem %s1059_s3, %s639_s21 }
  0x10   : > { %789 = vmatprep.subr.bf16.mxu0 %v896_v1  ;;  %846 = vmatprep.subr.bf16.mxu1 %v896_v1  ;;  %v877_v9 = vld [vmem:[%s953_s24] sm:$0xff]   ;;  %v878_v10 = vld [vmem:[%s953_s24 + $0x30] sm:$0xff]   ;;  %v879_v11 = vld [vmem:[%s953_s24 + $0x8] sm:$0xff]  }
  0x11   : > { %v880_v12 = vld [vmem:[%s953_s24 + $0x38] sm:$0xff]   ;;  %v881_v13 = vld [vmem:[%s953_s24 + $0x10] sm:$0xff]   ;;  %v882_v14 = vld [vmem:[%s953_s24 + $0x40] sm:$0xff]  }
  0x12   : > { %v883_v15 = vld [vmem:[%s953_s24 + $0x18] sm:$0xff]   ;;  %v884_v16 = vld [vmem:[%s953_s24 + $0x48] sm:$0xff]   ;;  %v885_v17 = vld [vmem:[%s953_s24 + $0x20] sm:$0xff]  }
  0x13   : > { %790 = vmatpush3.bf16.msra.mxu0 %v872_v4  ;;  %854 = vmatpush3.bf16.msra.mxu1 %v872_v4  ;;  %v886_v18 = vld [vmem:[%s953_s24 + $0x50] ss:$0 sps:$4 sm:$0xff]   ;;  %v887_v19 = vld [vmem:[%s953_s24 + $0x28] sm:$0xff]  }
  0x14   : > { %791 = vmatprep.subr.bf16.mxu0 %v896_v1  ;;  %847 = vmatprep.subr.bf16.mxu1 %v896_v1 }
  0x17   : > { %792 = vmatpush3.bf16.msra.mxu0 %v873_v5  ;;  %855 = vmatpush3.bf16.msra.mxu1 %v873_v5 }
  0x18   : > { %793 = vmatprep.subr.bf16.mxu0 %v896_v1  ;;  %848 = vmatprep.subr.bf16.mxu1 %v896_v1 }
  0x1b   : > { %794 = vmatpush3.bf16.msra.mxu0 %v874_v6  ;;  %856 = vmatpush3.bf16.msra.mxu1 %v874_v6 }
  0x1c   : > { %795 = vmatprep.subr.bf16.mxu0 %v896_v1  ;;  %849 = vmatprep.subr.bf16.mxu1 %v896_v1 }
  0x1f   : > { %796 = vmatpush3.bf16.msra.mxu0 %v875_v7  ;;  %857 = vmatpush3.bf16.msra.mxu1 %v875_v7 }
  0x20   : > { %797 = vmatprep.subr.bf16.mxu0 %v896_v1  ;;  %850 = vmatprep.subr.bf16.mxu1 %v896_v1 }
  0x23   : > { %798 = vmatpush3.bf16.msra.mxu0 %v876_v8  ;;  %858 = vmatpush3.bf16.msra.mxu1 %v876_v8 }
  0x26   : > { %800 = vmatmul.mubr.bf16.vlgmr.msra.gmra.mrb[0].mxu0 %v877_v9  ;;  %824 = vmatmul.mubr.bf16.vlgmr.msra.gmra.mrb[0].mxu1 %v878_v10 }
  0x27   : > { %803 = vmatprep.mubr.msk.bf16.mxu0 %vm897_vm0, %v896_v1  ;;  %827 = vmatprep.mubr.msk.bf16.mxu1 %vm897_vm0, %v896_v1 }
  0x2e   : > { %804 = vmatmul.mubr.bf16.gmra.mrb[4].mxu0 %v879_v11  ;;  %828 = vmatmul.mubr.bf16.gmra.mrb[4].mxu1 %v880_v12 }
  0x2f   : > { %807 = vmatprep.mubr.msk.bf16.mxu0 %vm897_vm0, %v896_v1  ;;  %831 = vmatprep.mubr.msk.bf16.mxu1 %vm897_vm0, %v896_v1 }
  0x36   : > { %808 = vmatmul.mubr.bf16.gmra.mrb[8].mxu0 %v881_v13  ;;  %832 = vmatmul.mubr.bf16.gmra.mrb[8].mxu1 %v882_v14 }
  0x37   : > { %811 = vmatprep.mubr.msk.bf16.mxu0 %vm897_vm0, %v896_v1  ;;  %835 = vmatprep.mubr.msk.bf16.mxu1 %vm897_vm0, %v896_v1 }
  0x3e   : > { %812 = vmatmul.mubr.bf16.gmra.mrb[12].mxu0 %v883_v15  ;;  %836 = vmatmul.mubr.bf16.gmra.mrb[12].mxu1 %v884_v16 }
  0x3f   : > { %815 = vmatprep.mubr.msk.bf16.mxu0 %vm897_vm0, %v896_v1  ;;  %839 = vmatprep.mubr.msk.bf16.mxu1 %vm897_vm0, %v896_v1 }
  0x46   : > { %816 = vmatmul.mubr.bf16.gmra.mrb[16].mxu0 %v885_v17  ;;  %840 = vmatmul.mubr.bf16.gmra.mrb[16].mxu1 %v886_v18 }
  0x47   : > { %819 = vmatprep.mubr.msk.bf16.mxu0 %vm897_vm0, %v896_v1 }
  0x4e   : > { %820 = vmatmul.mubr.bf16.gmra.mrb[20].mxu0 %v887_v19 }
  0xf9   : > { %v365_v21 = vpop.f32.mrb[0].mxu0  ;;  %v413_v22 = vpop.f32.mrb[0].mxu1 }
  0xfa   : > { %v366_v23 = vadd.f32 %v1012_v20, %v365_v21  ;;  %v801_v24 = vpop.f32.mrb[1].mxu0  ;;  %v414_v25 = vadd.f32 %v1012_v20, %v413_v22  ;;  %v825_v26 = vpop.f32.mrb[1].mxu1 }
  0xfb   : > { %v368_v27 = vpop.f32.mrb[2].mxu0  ;;  %v416_v28 = vpop.f32.mrb[2].mxu1 }
  0xfc   : > { %v369_v29 = vadd.f32 %v1012_v20, %v368_v27  ;;  %v802_v30 = vpop.f32.mrb[3].mxu0  ;;  %v463_v31 = vmax.f32 %v414_v25, 0.0  ;;  %v417_v32 = vadd.f32 %v1012_v20, %v416_v28  ;;  %v826_v33 = vpop.f32.mrb[3].mxu1  ;;  %v451_v34 = vmax.f32 %v366_v23, 0.0 }
  0xfe   : > { %v452_v35 = vmax.f32 %v369_v29, 0.0  ;;  %v464_v36 = vmax.f32 %v417_v32, 0.0 }
 0x100   : > { %v708_v37 = vpack.c.bf16 %v452_v35, %v451_v34  ;;  %v738_v38 = vpack.c.bf16 %v464_v36, %v463_v31 }
 0x101   : > { %v373_v39 = vpop.f32.mrb[4].mxu0  ;;  %v421_v40 = vpop.f32.mrb[4].mxu1 }
 0x102   : > { %709 = vst [vmem:[%s1023_s13] sm:$0xff] %v708_v37   ;;  %v374_v41 = vadd.f32 %v1012_v20, %v373_v39  ;;  %v805_v42 = vpop.f32.mrb[5].mxu0  ;;  %760 = vst [vmem:[%s1023_s13 + $0x30] sm:$0xff] %v738_v38   ;;  %v422_v43 = vadd.f32 %v1012_v20, %v421_v40  ;;  %v829_v44 = vpop.f32.mrb[5].mxu1 }
 0x103   : > { %v376_v45 = vpop.f32.mrb[6].mxu0  ;;  %v424_v46 = vpop.f32.mrb[6].mxu1 }
 0x104   : > { %v377_v47 = vadd.f32 %v1012_v20, %v376_v45  ;;  %v806_v48 = vpop.f32.mrb[7].mxu0  ;;  %v465_v49 = vmax.f32 %v422_v43, 0.0  ;;  %v425_v50 = vadd.f32 %v1012_v20, %v424_v46  ;;  %v830_v51 = vpop.f32.mrb[7].mxu1  ;;  %v453_v52 = vmax.f32 %v374_v41, 0.0 }
 0x106   : > { %v454_v53 = vmax.f32 %v377_v47, 0.0  ;;  %v466_v54 = vmax.f32 %v425_v50, 0.0 }
 0x108   : > { %v713_v55 = vpack.c.bf16 %v454_v53, %v453_v52  ;;  %v743_v56 = vpack.c.bf16 %v466_v54, %v465_v49 }
 0x109   : > { %v381_v57 = vpop.f32.mrb[8].mxu0  ;;  %v429_v58 = vpop.f32.mrb[8].mxu1 }
 0x10a   : > { %755 = vst [vmem:[%s1023_s13 + $0x8] sm:$0xff] %v713_v55   ;;  %v382_v59 = vadd.f32 %v1012_v20, %v381_v57  ;;  %v809_v60 = vpop.f32.mrb[9].mxu0  ;;  %761 = vst [vmem:[%s1023_s13 + $0x38] sm:$0xff] %v743_v56   ;;  %v430_v61 = vadd.f32 %v1012_v20, %v429_v58  ;;  %v833_v62 = vpop.f32.mrb[9].mxu1 }
 0x10b   : > { %v384_v63 = vpop.f32.mrb[10].mxu0  ;;  %v432_v0 = vpop.f32.mrb[10].mxu1 }
 0x10c   : > { %v385_v1 = vadd.f32 %v1012_v20, %v384_v63  ;;  %v810_v2 = vpop.f32.mrb[11].mxu0  ;;  %v467_v3 = vmax.f32 %v430_v61, 0.0  ;;  %v433_v4 = vadd.f32 %v1012_v20, %v432_v0  ;;  %v834_v5 = vpop.f32.mrb[11].mxu1  ;;  %v455_v6 = vmax.f32 %v382_v59, 0.0 }
 0x10e   : > { %v456_v7 = vmax.f32 %v385_v1, 0.0  ;;  %v468_v8 = vmax.f32 %v433_v4, 0.0 }
 0x110   : > { %v718_v9 = vpack.c.bf16 %v456_v7, %v455_v6  ;;  %v748_v10 = vpack.c.bf16 %v468_v8, %v467_v3 }
 0x111   : > { %v389_v11 = vpop.f32.mrb[12].mxu0  ;;  %v437_v12 = vpop.f32.mrb[12].mxu1 }
 0x112   : > { %756 = vst [vmem:[%s1023_s13 + $0x10] sm:$0xff] %v718_v9   ;;  %v390_v13 = vadd.f32 %v1012_v20, %v389_v11  ;;  %v813_v14 = vpop.f32.mrb[13].mxu0  ;;  %762 = vst [vmem:[%s1023_s13 + $0x40] sm:$0xff] %v748_v10   ;;  %v438_v15 = vadd.f32 %v1012_v20, %v437_v12  ;;  %v837_v16 = vpop.f32.mrb[13].mxu1 }
 0x113   : > { %v392_v17 = vpop.f32.mrb[14].mxu0  ;;  %v440_v18 = vpop.f32.mrb[14].mxu1 }
 0x114   : > { %v393_v19 = vadd.f32 %v1012_v20, %v392_v17  ;;  %v814_v21 = vpop.f32.mrb[15].mxu0  ;;  %v469_v22 = vmax.f32 %v438_v15, 0.0  ;;  %v441_v23 = vadd.f32 %v1012_v20, %v440_v18  ;;  %v838_v24 = vpop.f32.mrb[15].mxu1  ;;  %v457_v25 = vmax.f32 %v390_v13, 0.0 }
 0x116   : > { %v458_v26 = vmax.f32 %v393_v19, 0.0  ;;  %v470_v27 = vmax.f32 %v441_v23, 0.0 }
 0x118   : > { %v723_v28 = vpack.c.bf16 %v458_v26, %v457_v25  ;;  %v753_v29 = vpack.c.bf16 %v470_v27, %v469_v22 }
 0x119   : > { %v397_v30 = vpop.f32.mrb[16].mxu0  ;;  %v445_v31 = vpop.f32.mrb[16].mxu1 }
 0x11a   : > { %757 = vst [vmem:[%s1023_s13 + $0x18] sm:$0xff] %v723_v28   ;;  %v398_v32 = vadd.f32 %v1012_v20, %v397_v30  ;;  %v817_v33 = vpop.f32.mrb[17].mxu0  ;;  %763 = vst [vmem:[%s1023_s13 + $0x48] sm:$0xff] %v753_v29   ;;  %v446_v34 = vadd.f32 %v1012_v20, %v445_v31  ;;  %v841_v35 = vpop.f32.mrb[17].mxu1 }
 0x11b   : > { %v400_v36 = vpop.f32.mrb[18].mxu0  ;;  %v448_v37 = vpop.f32.mrb[18].mxu1 }
 0x11c   : > { %v401_v38 = vadd.f32 %v1012_v20, %v400_v36  ;;  %v818_v39 = vpop.f32.mrb[19].mxu0  ;;  %v471_v40 = vmax.f32 %v446_v34, 0.0  ;;  %v842_v41 = vpop.f32.mrb[19].mxu1  ;;  %v459_v42 = vmax.f32 %v398_v32, 0.0 }
 0x11e   : > { %v460_v43 = vmax.f32 %v401_v38, 0.0  ;;  %v704_v44 = vpack.c.bf16 %v471_v40, %v471_v40 }
 0x120   : > { %v728_v45 = vpack.c.bf16 %v460_v43, %v459_v42  ;;  %577 = vst [vmem:[%s1023_s13 + $0x50] sm:$0xf] %v704_v44 }
 0x121   : > { %v405_v46 = vpop.f32.mrb[20].mxu0 }
 0x122   : > { %758 = vst [vmem:[%s1023_s13 + $0x20] sm:$0xff] %v728_v45   ;;  %v406_v47 = vadd.f32 %v1012_v20, %v405_v46  ;;  %v821_v48 = vpop.f32.mrb[21].mxu0 }
 0x123   : > { %v408_v49 = vpop.f32.mrb[22].mxu0 }
 0x124   : > { %v409_v50 = vadd.f32 %v1012_v20, %v408_v49  ;;  %v822_v51 = vpop.f32.mrb[23].mxu0  ;;  %v461_v52 = vmax.f32 %v406_v47, 0.0 }
 0x126   : > { %v462_v53 = vmax.f32 %v409_v50, 0.0 }
 0x128   : > { %v733_v54 = vpack.c.bf16 %v462_v53, %v461_v52 }
 0x12a   : > { %759 = vst [vmem:[%s1023_s13 + $0x28] sm:$0xff] %v733_v54  }
 0x12b PF: > { %s13_s12 = sadd.s32 1, %s894_s12  }
 0x12c   : > { %p10_p4 = scmp.ge.s32.totalorder %s13_s12, 6  }
 0x12e   :  { %12 = sbr.rel (!%p10_p4) target bundleno = 1 (0x1), region = 62 }

// kernel: conv_block_forward.5
= control target key start
LH: loop header
LB: loop body
LE: loop exit
PB: predicated region body
PF: predicated region fallthrough
CT: control target
= control target key end

     0   :  { %s931_s12 = smov 0   ;;  %s1282_s0 = inlined_call_operand.vmem [shape: f32[672,128], index: 0, kind: input, shape index: {}, may-alias: {0,3}]   ;;  %s1283_s1 = inlined_call_operand.vmem [shape: bf16[672,128], index: 1, kind: input, shape index: {}]   ;;  %s1284_s2 = inlined_call_operand.vmem [shape: bf16[128,128], index: 2, kind: input, shape index: {}]   ;;  %s1285_s3 = inlined_call_operand.vmem [shape: f32[672,128], index: 3, kind: output, shape index: {}, may-alias: {0,3}]  }
   0x1 LB: > { %s744_s13 = sadd.s32 4294967295, %s905_s12   ;;  %p748_p0 = scmp.ge.s32.totalorder %s905_s12, 1  ;;  %s905_s12 = sphi %s931_s12, %s13_s12  }
   0x2   : > { %p149_p1 = scmp.lt.s32.totalorder %s905_s12, 5 }
   0x4   : > { %p150_p2 = pnand %p748_p0, %p149_p1 }
   0x5   : > { %v880_v0 = vld [vmem:[%s1284_s2] sm:$0xff] (!%p150_p2)   ;;  %v907_v1 = vmov (!%p150_p2), 0.0   ;;  %v881_v2 = vld [vmem:[%s1284_s2 + $0x8] sm:$0xff] (!%p150_p2)   ;;  %s178_s18 = smul.u32 (!%p150_p2), 21, %s744_s13  ;;  %vm908_vm0 = vmmov (!%p150_p2), 0   ;;  %v882_v3 = vld [vmem:[%s1284_s2 + $0x10] sm:$0xff] (!%p150_p2)  }
   0x6   : > { %153 = sbr.rel (%p150_p2) target bundleno = 535 (0x217), region = 32  ;;  %792 = vmatprep.subr.bf16.mxu0 (!%p150_p2), %v907_v1  ;;  %852 = vmatprep.subr.bf16.mxu1 (!%p150_p2), %v907_v1  ;;  %v883_v4 = vld [vmem:[%s1284_s2 + $0x18] sm:$0xff] (!%p150_p2)   ;;  %v884_v5 = vld [vmem:[%s1284_s2 + $0x20] sm:$0xff] (!%p150_p2)   ;;  %v885_v6 = vld [vmem:[%s1284_s2 + $0x28] sm:$0xff] (!%p150_p2)   ;;  %s909_s8 = smov (!%p150_p2), 120  }
   0x7   : > { %793 = vmatpush3.bf16.msra.mxu0 (!%p150_p2), %v880_v0  ;;  %860 = vmatpush3.bf16.msra.mxu1 (!%p150_p2), %v880_v0  ;;  %p179_p3 = scmp.lt.s32.totalorder (!%p150_p2), %s178_s18, 83  ;;  %v886_v7 = vld [vmem:[%s1284_s2 + $0x30] sm:$0xff] (!%p150_p2)   ;;  %v887_v8 = vld [vmem:[%s1284_s2 + $0x38] sm:$0xff] (!%p150_p2)   ;;  %s910_s9 = smov (!%p150_p2), 112  }
   0x8   : > { %794 = vmatprep.subr.bf16.mxu0 (!%p150_p2), %v907_v1  ;;  %853 = vmatprep.subr.bf16.mxu1 (!%p150_p2), %v907_v1 }
   0x9   : > { %808 = vmatprep.mubr.msk.bf16.mxu0 (!%p150_p2), %vm908_vm0, %v907_v1  ;;  %832 = vmatprep.mubr.msk.bf16.mxu1 (!%p150_p2), %vm908_vm0, %v907_v1 }
   0xb   : > { %795 = vmatpush3.bf16.msra.mxu0 (!%p150_p2), %v881_v2  ;;  %861 = vmatpush3.bf16.msra.mxu1 (!%p150_p2), %v881_v2 }
   0xc   : > { %796 = vmatprep.subr.bf16.mxu0 (!%p150_p2), %v907_v1  ;;  %854 = vmatprep.subr.bf16.mxu1 (!%p150_p2), %v907_v1 }
   0xd   : > { %s1287_s18 = smov (!%p179_p3, %s178_s18), 83 }
   0xe   : > { %s750_s21 = sshll.u32 %s1287_s18, 2  ;;  %s749_s10 = sshll.u32 %s1287_s18, 3 }
   0xf   : > { %s964_s24 = scalar_lea.vmem %s1283_s1, %s750_s21  ;;  %797 = vmatpush3.bf16.msra.mxu0 %v882_v3  ;;  %862 = vmatpush3.bf16.msra.mxu1 %v882_v3  ;;  %s182_s14 = scalar_lea.vmem %s1282_s0, %s749_s10 }
  0x10   : > { %798 = vmatprep.subr.bf16.mxu0 %v907_v1  ;;  %855 = vmatprep.subr.bf16.mxu1 %v907_v1  ;;  %v888_v9 = vld [vmem:[%s964_s24] sm:$0xff]   ;;  %v889_v10 = vld [vmem:[%s964_s24 + $0x30] sm:$0xff]   ;;  %v890_v11 = vld [vmem:[%s964_s24 + $0x8] sm:$0xff]   ;;  %s1221_s17 = scalar_lea.vmem %s1285_s3, %s749_s10 }
  0x11   : > { %v891_v12 = vld [vmem:[%s964_s24 + $0x38] sm:$0xff]   ;;  %v892_v13 = vld [vmem:[%s964_s24 + $0x10] sm:$0xff]   ;;  %v893_v14 = vld [vmem:[%s964_s24 + $0x40] sm:$0xff]  }
  0x12   : > { %v894_v15 = vld [vmem:[%s964_s24 + $0x18] sm:$0xff]   ;;  %v895_v16 = vld [vmem:[%s964_s24 + $0x48] sm:$0xff]   ;;  %v896_v17 = vld [vmem:[%s964_s24 + $0x20] sm:$0xff]  }
  0x13   : > { %799 = vmatpush3.bf16.msra.mxu0 %v883_v4  ;;  %863 = vmatpush3.bf16.msra.mxu1 %v883_v4  ;;  %v898_v18 = vld [vmem:[%s964_s24 + $0x50] ss:$0 sps:$4 sm:$0xff]   ;;  %v897_v19 = vld [vmem:[%s964_s24 + $0x28] sm:$0xff]  }
  0x14   : > { %800 = vmatprep.subr.bf16.mxu0 %v907_v1  ;;  %856 = vmatprep.subr.bf16.mxu1 %v907_v1 }
  0x17   : > { %801 = vmatpush3.bf16.msra.mxu0 %v884_v5  ;;  %864 = vmatpush3.bf16.msra.mxu1 %v884_v5 }
  0x18   : > { %802 = vmatprep.subr.bf16.mxu0 %v907_v1  ;;  %857 = vmatprep.subr.bf16.mxu1 %v907_v1 }
  0x1b   : > { %803 = vmatpush3.bf16.msra.mxu0 %v885_v6  ;;  %865 = vmatpush3.bf16.msra.mxu1 %v885_v6 }
  0x1c   : > { %804 = vmatprep.subr.bf16.mxu0 %v907_v1  ;;  %858 = vmatprep.subr.bf16.mxu1 %v907_v1 }
  0x1f   : > { %805 = vmatpush3.bf16.msra.mxu0 %v886_v7  ;;  %866 = vmatpush3.bf16.msra.mxu1 %v886_v7 }
  0x20   : > { %806 = vmatprep.subr.bf16.mxu0 %v907_v1  ;;  %859 = vmatprep.subr.bf16.mxu1 %v907_v1 }
  0x23   : > { %807 = vmatpush3.bf16.msra.mxu0 %v887_v8  ;;  %867 = vmatpush3.bf16.msra.mxu1 %v887_v8 }
  0x26   : > { %809 = vmatmul.mubr.bf16.vlgmr.msra.gmra.mrb[0].mxu0 %v888_v9  ;;  %833 = vmatmul.mubr.bf16.vlgmr.msra.gmra.mrb[0].mxu1 %v889_v10 }
  0x27   : > { %812 = vmatprep.mubr.msk.bf16.mxu0 %vm908_vm0, %v907_v1  ;;  %836 = vmatprep.mubr.msk.bf16.mxu1 %vm908_vm0, %v907_v1 }
  0x2e   : > { %813 = vmatmul.mubr.bf16.gmra.mrb[4].mxu0 %v890_v11  ;;  %837 = vmatmul.mubr.bf16.gmra.mrb[4].mxu1 %v891_v12 }
  0x2f   : > { %816 = vmatprep.mubr.msk.bf16.mxu0 %vm908_vm0, %v907_v1  ;;  %840 = vmatprep.mubr.msk.bf16.mxu1 %vm908_vm0, %v907_v1 }
  0x36   : > { %817 = vmatmul.mubr.bf16.gmra.mrb[8].mxu0 %v892_v13  ;;  %841 = vmatmul.mubr.bf16.gmra.mrb[8].mxu1 %v893_v14 }
  0x37   : > { %820 = vmatprep.mubr.msk.bf16.mxu0 %vm908_vm0, %v907_v1  ;;  %844 = vmatprep.mubr.msk.bf16.mxu1 %vm908_vm0, %v907_v1 }
  0x3e   : > { %821 = vmatmul.mubr.bf16.gmra.mrb[12].mxu0 %v894_v15  ;;  %845 = vmatmul.mubr.bf16.gmra.mrb[12].mxu1 %v895_v16 }
  0x3f   : > { %824 = vmatprep.mubr.msk.bf16.mxu0 %vm908_vm0, %v907_v1  ;;  %848 = vmatprep.mubr.msk.bf16.mxu1 %vm908_vm0, %v907_v1 }
  0x46   : > { %825 = vmatmul.mubr.bf16.gmra.mrb[16].mxu0 %v896_v17  ;;  %849 = vmatmul.mubr.bf16.gmra.mrb[16].mxu1 %v898_v18 }
  0x47   : > { %828 = vmatprep.mubr.msk.bf16.mxu0 %vm908_vm0, %v907_v1 }
  0x4e   : > { %829 = vmatmul.mubr.bf16.gmra.mrb[20].mxu0 %v897_v19 }
  0xf9   : > { %v1020_v20 = vpop.f32.mrb[0].mxu0  ;;  %v1022_v21 = vpop.f32.mrb[0].mxu1 }
  0xfa   : > { %v834_v22 = vpop.f32.mrb[1].mxu1  ;;  %466 = vrot.lane.b32.xlu0 %v1020_v20, %s909_s8  ;;  %v810_v23 = vpop.f32.mrb[1].mxu0 }
  0xfb   : > { %v1026_v24 = vpop.f32.mrb[2].mxu0  ;;  %v1028_v25 = vpop.f32.mrb[2].mxu1 }
  0xfc   : > { %492 = vrot.lane.b32.xlu1 %v1028_v25, %s909_s8  ;;  %v811_v26 = vpop.f32.mrb[3].mxu0  ;;  %v835_v27 = vpop.f32.mrb[3].mxu1 }
  0xfe   : > { %490 = vrot.lane.b32.xlu0 %v1022_v21, %s909_s8 }
 0x101   : > { %v1034_v28 = vpop.f32.mrb[4].mxu0  ;;  %v1036_v29 = vpop.f32.mrb[4].mxu1 }
 0x102   : > { %468 = vrot.lane.b32.xlu0 %v1026_v24, %s909_s8  ;;  %470 = vrot.lane.b32.xlu1 %v1034_v28, %s909_s8  ;;  %v814_v30 = vpop.f32.mrb[5].mxu0  ;;  %v838_v31 = vpop.f32.mrb[5].mxu1 }
 0x103   : > { %v1042_v32 = vpop.f32.mrb[6].mxu0  ;;  %v1044_v33 = vpop.f32.mrb[6].mxu1 }
 0x104   : > { %v815_v34 = vpop.f32.mrb[7].mxu0  ;;  %v839_v35 = vpop.f32.mrb[7].mxu1 }
 0x106   : > { %494 = vrot.lane.b32.xlu0 %v1036_v29, %s909_s8  ;;  %472 = vrot.lane.b32.xlu1 %v1042_v32, %s909_s8 }
 0x109   : > { %v1050_v36 = vpop.f32.mrb[8].mxu0  ;;  %v1052_v37 = vpop.f32.mrb[8].mxu1 }
 0x10a   : > { %496 = vrot.lane.b32.xlu1 %v1044_v33, %s909_s8  ;;  %474 = vrot.lane.b32.xlu0 %v1050_v36, %s909_s8  ;;  %v818_v38 = vpop.f32.mrb[9].mxu0  ;;  %v842_v39 = vpop.f32.mrb[9].mxu1 }
 0x10b   : > { %v1058_v40 = vpop.f32.mrb[10].mxu0  ;;  %v1060_v41 = vpop.f32.mrb[10].mxu1 }
 0x10c   : > { %v819_v42 = vpop.f32.mrb[11].mxu0  ;;  %v843_v43 = vpop.f32.mrb[11].mxu1 }
 0x10d   : > { %v592_v43 = vld [vmem:[%s182_s14] sm:$0xff] }
 0x10e   : > { %498 = vrot.lane.b32.xlu0 %v1052_v37, %s909_s8  ;;  %476 = vrot.lane.b32.xlu1 %v1058_v40, %s909_s8 }
 0x111   : > { %v1066_v44 = vpop.f32.mrb[12].mxu0  ;;  %v1068_v45 = vpop.f32.mrb[12].mxu1 }
 0x112   : > { %500 = vrot.lane.b32.xlu1 %v1060_v41, %s909_s8  ;;  %478 = vrot.lane.b32.xlu0 %v1066_v44, %s909_s8  ;;  %v822_v46 = vpop.f32.mrb[13].mxu0  ;;  %v846_v47 = vpop.f32.mrb[13].mxu1 }
 0x113   : > { %v1074_v48 = vpop.f32.mrb[14].mxu0  ;;  %v1076_v49 = vpop.f32.mrb[14].mxu1  ;;  %v593_v46 = vld [vmem:[%s182_s14 + $0x8] sm:$0xff]  ;;  %v594_v47 = vld [vmem:[%s182_s14 + $0x10] sm:$0xff] }
 0x114   : > { %v823_v50 = vpop.f32.mrb[15].mxu0  ;;  %v847_v51 = vpop.f32.mrb[15].mxu1 }
 0x115   : > { %v595_v50 = vld [vmem:[%s182_s14 + $0x18] sm:$0xff]  ;;  %v596_v51 = vld [vmem:[%s182_s14 + $0x20] sm:$0xff] }
 0x116   : > { %502 = vrot.lane.b32.xlu0 %v1068_v45, %s909_s8  ;;  %480 = vrot.lane.b32.xlu1 %v1074_v48, %s909_s8 }
 0x119   : > { %v1082_v52 = vpop.f32.mrb[16].mxu0  ;;  %v1084_v53 = vpop.f32.mrb[16].mxu1 }
 0x11a   : > { %482 = vrot.lane.b32.xlu0 %v1082_v52, %s909_s8  ;;  %v826_v54 = vpop.f32.mrb[17].mxu0  ;;  %v850_v55 = vpop.f32.mrb[17].mxu1 }
 0x11b   : > { %v1088_v56 = vpop.f32.mrb[18].mxu0  ;;  %v463_v57 = vpop.f32.mrb[18].mxu1  ;;  %v597_v54 = vld [vmem:[%s182_s14 + $0x28] sm:$0xff]  ;;  %v598_v55 = vld [vmem:[%s182_s14 + $0x30] sm:$0xff] }
 0x11c   : > { %484 = vrot.lane.b32.xlu1 %v1088_v56, %s909_s8  ;;  %v827_v58 = vpop.f32.mrb[19].mxu0  ;;  %v851_v59 = vpop.f32.mrb[19].mxu1  ;;  %v1208_v57 = vld [vmem:[%s182_s14 + $0x90] sm:$0xff] }
 0x11d   : > { %v1210_v58 = vld [vmem:[%s182_s14 + $0x38] sm:$0xff] }
 0x121   : > { %v420_v60 = vpop.f32.mrb[20].mxu0 }
 0x122   : > { %486 = vrot.lane.b32.xlu0 %v420_v60, %s909_s8  ;;  %v830_v61 = vpop.f32.mrb[21].mxu0 }
 0x123   : > { %v423_v62 = vpop.f32.mrb[22].mxu0  ;;  %v1214_v61 = vld [vmem:[%s182_s14 + $0x48] sm:$0xff] }
 0x124   : > { %488 = vrot.lane.b32.xlu1 %v423_v62, %s909_s8  ;;  %v831_v63 = vpop.f32.mrb[23].mxu0 }
 0x126   : > { %506 = vrot.lane.b32.xlu0 %v1084_v53, %s909_s8 }
 0x128   : > { %504 = vrot.lane.b32.xlu1 %v1076_v49, %s909_s8 }
 0x16c   : > { %v467_v0 = vpop.permute.xlu0 %466 }
 0x16d   : > { %v1099_v1 = vmax.f32 %v1020_v20, %v467_v0  ;;  %v1223_v0 = vld [vmem:[%s182_s14 + $0x58] sm:$0xff] }
 0x16e   : > { %v493_v2 = vpop.permute.xlu1 %492 }
 0x16f   : > { %529 = vrot.lane.b32.xlu1 %v1099_v1, %s910_s9  ;;  %v1119_v11 = vmax.f32 %v1028_v25, %v493_v2  ;;  %v1227_v2 = vld [vmem:[%s182_s14 + $0x98] sm:$0xff] }
 0x170   : > { %v491_v3 = vpop.permute.xlu0 %490 }
 0x171   : > { %v1104_v4 = vmax.f32 %v1022_v21, %v491_v3 }
 0x173   : > { %553 = vrot.lane.b32.xlu1 %v1104_v4, %s910_s9 }
 0x174   : > { %v469_v5 = vpop.permute.xlu0 %468  ;;  %v471_v6 = vpop.permute.xlu1 %470 }
 0x175   : > { %v1109_v7 = vmax.f32 %v1026_v24, %v469_v5  ;;  %v1112_v8 = vmax.f32 %v1034_v28, %v471_v6 }
 0x177   : > { %531 = vrot.lane.b32.xlu0 %v1109_v7, %s910_s9  ;;  %533 = vrot.lane.b32.xlu1 %v1112_v8, %s910_s9 }
 0x178   : > { %v495_v9 = vpop.permute.xlu0 %494  ;;  %v473_v10 = vpop.permute.xlu1 %472 }
 0x179   : > { %v1122_v12 = vmax.f32 %v1036_v29, %v495_v9  ;;  %v1129_v15 = vmax.f32 %v1042_v32, %v473_v10 }
 0x17b   : > { %555 = vrot.lane.b32.xlu0 %v1119_v11, %s910_s9  ;;  %557 = vrot.lane.b32.xlu1 %v1122_v12, %s910_s9 }
 0x17c   : > { %v497_v13 = vpop.permute.xlu1 %496  ;;  %v475_v14 = vpop.permute.xlu0 %474 }
 0x17d   : > { %v1132_v16 = vmax.f32 %v1050_v36, %v475_v14  ;;  %v1139_v19 = vmax.f32 %v1044_v33, %v497_v13 }
 0x17f   : > { %535 = vrot.lane.b32.xlu0 %v1129_v15, %s910_s9  ;;  %537 = vrot.lane.b32.xlu1 %v1132_v16, %s910_s9 }
 0x180   : > { %v499_v17 = vpop.permute.xlu0 %498  ;;  %v477_v18 = vpop.permute.xlu1 %476 }
 0x181   : > { %v1142_v20 = vmax.f32 %v1052_v37, %v499_v17  ;;  %v1149_v23 = vmax.f32 %v1058_v40, %v477_v18 }
 0x183   : > { %559 = vrot.lane.b32.xlu0 %v1139_v19, %s910_s9  ;;  %561 = vrot.lane.b32.xlu1 %v1142_v20, %s910_s9 }
 0x184   : > { %v501_v21 = vpop.permute.xlu1 %500  ;;  %v479_v22 = vpop.permute.xlu0 %478 }
 0x185   : > { %v1152_v24 = vmax.f32 %v1066_v44, %v479_v22  ;;  %v1159_v26 = vmax.f32 %v1060_v41, %v501_v21 }
 0x187   : > { %539 = vrot.lane.b32.xlu0 %v1149_v23, %s910_s9  ;;  %541 = vrot.lane.b32.xlu1 %v1152_v24, %s910_s9 }
 0x188   : > { %v503_v25 = vpop.permute.xlu0 %502  ;;  %v481_v28 = vpop.permute.xlu1 %480 }
 0x189   : > { %v1162_v27 = vmax.f32 %v1068_v45, %v503_v25  ;;  %v1169_v30 = vmax.f32 %v1074_v48, %v481_v28  ;;  %v604_v45 = vld [vmem:[%s182_s14 + $0x60] sm:$0xff]  ;;  %v605_v48 = vld [vmem:[%s182_s14 + $0x68] sm:$0xff] }
 0x18b   : > { %563 = vrot.lane.b32.xlu0 %v1159_v26, %s910_s9  ;;  %565 = vrot.lane.b32.xlu1 %v1162_v27, %s910_s9 }
 0x18c   : > { %v483_v29 = vpop.permute.xlu0 %482 }
 0x18d   : > { %v1172_v31 = vmax.f32 %v1082_v52, %v483_v29  ;;  %v607_v52 = vld [vmem:[%s182_s14 + $0x78] sm:$0xff] }
 0x18e   : > { %v485_v32 = vpop.permute.xlu1 %484 }
 0x18f   : > { %543 = vrot.lane.b32.xlu0 %v1169_v30, %s910_s9  ;;  %545 = vrot.lane.b32.xlu1 %v1172_v31, %s910_s9  ;;  %v1179_v33 = vmax.f32 %v1088_v56, %v485_v32  ;;  %v1206_v56 = vld [vmem:[%s182_s14 + $0x88] sm:$0xff] }
 0x193   : > { %547 = vrot.lane.b32.xlu0 %v1179_v33, %s910_s9 }
 0x194   : > { %v487_v34 = vpop.permute.xlu0 %486 }
 0x195   : > { %v1183_v35 = vmax.f32 %v420_v60, %v487_v34  ;;  %v1212_v60 = vld [vmem:[%s182_s14 + $0x40] sm:$0xff] }
 0x196   : > { %v489_v36 = vpop.permute.xlu1 %488 }
 0x197   : > { %v1185_v37 = vmax.f32 %v423_v62, %v489_v36  ;;  %549 = vrot.lane.b32.xlu1 %v1183_v35, %s910_s9  ;;  %v1216_v62 = vld [vmem:[%s182_s14 + $0x50] sm:$0xff] }
 0x198   : > { %v507_v38 = vpop.permute.xlu0 %506 }
 0x199   : > { %v1190_v39 = vmax.f32 %v1084_v53, %v507_v38  ;;  %551 = vrot.lane.b32.xlu0 %v1185_v37, %s910_s9  ;;  %v608_v53 = vld [vmem:[%s182_s14 + $0x80] sm:$0xff] }
 0x19a   : > { %v505_v40 = vpop.permute.xlu1 %504 }
 0x19b   : > { %v1195_v41 = vmax.f32 %v1076_v49, %v505_v40  ;;  %569 = vrot.lane.b32.xlu1 %v1190_v39, %s910_s9  ;;  %v606_v49 = vld [vmem:[%s182_s14 + $0x70] sm:$0xff] }
 0x19d   : > { %567 = vrot.lane.b32.xlu0 %v1195_v41, %s910_s9 }
 0x1e1   : > { %v530_v42 = vpop.permute.xlu1 %529 }
 0x1e2   : > { %v571_v44 = vmax.f32 %v1099_v1, %v530_v42  ;;  %v1225_v1 = vld [vmem:[%s182_s14 + $0xa0] sm:$0xff] }
 0x1e4   : > { %v613_v59 = vadd.f32 %v592_v43, %v571_v44 }
 0x1e5   : > { %v554_v63 = vpop.permute.xlu1 %553 }
 0x1e6   : > { %v634_v3 = vmax.f32 %v613_v59, 0.0  ;;  %v583_v5 = vmax.f32 %v1104_v4, %v554_v63 }
 0x1e8   : > { %v625_v6 = vadd.f32 %v604_v45, %v583_v5  ;;  %655 = vst [vmem:[%s1221_s17] sm:$0xff] %v634_v3 }
 0x1e9   : > { %v532_v9 = vpop.permute.xlu0 %531  ;;  %v534_v10 = vpop.permute.xlu1 %533 }
 0x1ea   : > { %v646_v13 = vmax.f32 %v625_v6, 0.0  ;;  %v572_v14 = vmax.f32 %v1109_v7, %v532_v9  ;;  %v573_v17 = vmax.f32 %v1112_v8, %v534_v10 }
 0x1ec   : > { %v614_v18 = vadd.f32 %v593_v46, %v572_v14  ;;  %v615_v21 = vadd.f32 %v594_v47, %v573_v17  ;;  %667 = vst [vmem:[%s1221_s17 + $0x60] sm:$0xff] %v646_v13 }
 0x1ed   : > { %v556_v22 = vpop.permute.xlu0 %555  ;;  %v558_v25 = vpop.permute.xlu1 %557 }
 0x1ee   : > { %v635_v28 = vmax.f32 %v614_v18, 0.0  ;;  %v636_v29 = vmax.f32 %v615_v21, 0.0  ;;  %v584_v4 = vmax.f32 %v1119_v11, %v556_v22  ;;  %v585_v32 = vmax.f32 %v1122_v12, %v558_v25 }
 0x1f0   : > { %v626_v34 = vadd.f32 %v605_v48, %v584_v4  ;;  %v627_v36 = vadd.f32 %v606_v49, %v585_v32  ;;  %656 = vst [vmem:[%s1221_s17 + $0x8] sm:$0xff] %v635_v28  ;;  %657 = vst [vmem:[%s1221_s17 + $0x10] sm:$0xff] %v636_v29 }
 0x1f1   : > { %v536_v7 = vpop.permute.xlu0 %535  ;;  %v538_v38 = vpop.permute.xlu1 %537 }
 0x1f2   : > { %v647_v8 = vmax.f32 %v626_v34, 0.0  ;;  %v648_v40 = vmax.f32 %v627_v36, 0.0  ;;  %v574_v42 = vmax.f32 %v1129_v15, %v536_v7  ;;  %v575_v43 = vmax.f32 %v1132_v16, %v538_v38 }
 0x1f4   : > { %v616_v44 = vadd.f32 %v595_v50, %v574_v42  ;;  %v617_v45 = vadd.f32 %v596_v51, %v575_v43  ;;  %668 = vst [vmem:[%s1221_s17 + $0x68] sm:$0xff] %v647_v8  ;;  %669 = vst [vmem:[%s1221_s17 + $0x70] sm:$0xff] %v648_v40 }
 0x1f5   : > { %v560_v11 = vpop.permute.xlu0 %559  ;;  %v562_v12 = vpop.permute.xlu1 %561 }
 0x1f6   : > { %v637_v46 = vmax.f32 %v616_v44, 0.0  ;;  %v638_v47 = vmax.f32 %v617_v45, 0.0  ;;  %v586_v48 = vmax.f32 %v1139_v19, %v560_v11  ;;  %v587_v49 = vmax.f32 %v1142_v20, %v562_v12 }
 0x1f8   : > { %v628_v59 = vadd.f32 %v607_v52, %v586_v48  ;;  %v629_v63 = vadd.f32 %v608_v53, %v587_v49  ;;  %658 = vst [vmem:[%s1221_s17 + $0x18] sm:$0xff] %v637_v46  ;;  %659 = vst [vmem:[%s1221_s17 + $0x20] sm:$0xff] %v638_v47 }
 0x1f9   : > { %v540_v15 = vpop.permute.xlu0 %539  ;;  %v542_v16 = vpop.permute.xlu1 %541 }
 0x1fa   : > { %v649_v50 = vmax.f32 %v628_v59, 0.0  ;;  %v650_v51 = vmax.f32 %v629_v63, 0.0  ;;  %v576_v3 = vmax.f32 %v1149_v23, %v540_v15  ;;  %v577_v5 = vmax.f32 %v1152_v24, %v542_v16 }
 0x1fc   : > { %v618_v6 = vadd.f32 %v597_v54, %v576_v3  ;;  %v619_v9 = vadd.f32 %v598_v55, %v577_v5  ;;  %670 = vst [vmem:[%s1221_s17 + $0x78] sm:$0xff] %v649_v50  ;;  %671 = vst [vmem:[%s1221_s17 + $0x80] sm:$0xff] %v650_v51 }
 0x1fd   : > { %v564_v19 = vpop.permute.xlu0 %563  ;;  %v566_v20 = vpop.permute.xlu1 %565 }
 0x1fe   : > { %v639_v52 = vmax.f32 %v618_v6, 0.0  ;;  %v640_v53 = vmax.f32 %v619_v9, 0.0  ;;  %v588_v10 = vmax.f32 %v1159_v26, %v564_v19  ;;  %v589_v13 = vmax.f32 %v1162_v27, %v566_v20 }
 0x200   : > { %v630_v14 = vadd.f32 %v1206_v56, %v588_v10  ;;  %v631_v23 = vadd.f32 %v1208_v57, %v589_v13  ;;  %660 = vst [vmem:[%s1221_s17 + $0x28] sm:$0xff] %v639_v52  ;;  %661 = vst [vmem:[%s1221_s17 + $0x30] sm:$0xff] %v640_v53 }
 0x201   : > { %v544_v24 = vpop.permute.xlu0 %543  ;;  %v546_v54 = vpop.permute.xlu1 %545 }
 0x202   : > { %v651_v55 = vmax.f32 %v630_v14, 0.0  ;;  %v652_v17 = vmax.f32 %v631_v23, 0.0  ;;  %v578_v18 = vmax.f32 %v1169_v30, %v544_v24  ;;  %v579_v21 = vmax.f32 %v1172_v31, %v546_v54 }
 0x204   : > { %v620_v26 = vadd.f32 %v1210_v58, %v578_v18  ;;  %v621_v27 = vadd.f32 %v1212_v60, %v579_v21  ;;  %672 = vst [vmem:[%s1221_s17 + $0x88] sm:$0xff] %v651_v55  ;;  %673 = vst [vmem:[%s1221_s17 + $0x90] sm:$0xff] %v652_v17 }
 0x205   : > { %v548_v56 = vpop.permute.xlu0 %547 }
 0x206   : > { %v641_v57 = vmax.f32 %v620_v26, 0.0  ;;  %v642_v22 = vmax.f32 %v621_v27, 0.0  ;;  %v580_v25 = vmax.f32 %v1179_v33, %v548_v56 }
 0x208   : > { %v622_v28 = vadd.f32 %v1214_v61, %v580_v25  ;;  %662 = vst [vmem:[%s1221_s17 + $0x38] sm:$0xff] %v641_v57  ;;  %663 = vst [vmem:[%s1221_s17 + $0x40] sm:$0xff] %v642_v22 }
 0x209   : > { %v550_v30 = vpop.permute.xlu1 %549 }
 0x20a   : > { %v643_v29 = vmax.f32 %v622_v28, 0.0  ;;  %v581_v31 = vmax.f32 %v1183_v35, %v550_v30 }
 0x20b   : > { %v552_v58 = vpop.permute.xlu0 %551 }
 0x20c   : > { %v623_v60 = vadd.f32 %v1216_v62, %v581_v31  ;;  %v582_v4 = vmax.f32 %v1185_v37, %v552_v58  ;;  %664 = vst [vmem:[%s1221_s17 + $0x48] sm:$0xff] %v643_v29 }
 0x20d   : > { %v570_v32 = vpop.permute.xlu1 %569 }
 0x20e   : > { %v644_v33 = vmax.f32 %v623_v60, 0.0  ;;  %v624_v61 = vadd.f32 %v1223_v0, %v582_v4  ;;  %v591_v34 = vmax.f32 %v1190_v39, %v570_v32 }
 0x20f   : > { %v568_v36 = vpop.permute.xlu0 %567 }
 0x210   : > { %v645_v7 = vmax.f32 %v624_v61, 0.0  ;;  %v633_v38 = vadd.f32 %v1225_v1, %v591_v34  ;;  %v590_v35 = vmax.f32 %v1195_v41, %v568_v36  ;;  %665 = vst [vmem:[%s1221_s17 + $0x50] sm:$0xff] %v644_v33 }
 0x212   : > { %v654_v8 = vmax.f32 %v633_v38, 0.0  ;;  %v632_v62 = vadd.f32 %v1227_v2, %v590_v35  ;;  %666 = vst [vmem:[%s1221_s17 + $0x58] sm:$0xff] %v645_v7 }
 0x214   : > { %v653_v37 = vmax.f32 %v632_v62, 0.0  ;;  %675 = vst [vmem:[%s1221_s17 + $0xa0] sm:$0xff] %v654_v8 }
 0x216   : > { %674 = vst [vmem:[%s1221_s17 + $0x98] sm:$0xff] %v653_v37 }
 0x217 PF: > { %s13_s12 = sadd.s32 1, %s905_s12  }
 0x218   : > { %p10_p4 = scmp.ge.s32.totalorder %s13_s12, 6  }
 0x21a   :  { %12 = sbr.rel (!%p10_p4) target bundleno = 1 (0x1), region = 65 }

</bundles_post_ra>
